<compile_context>
chip_gen: v6e
topology: v6e:2x2x1
jax: 0.10.0
libtpu: 0.0.40
codegen_flags: <defaults>
</compile_context>

<pallas_src>
import jax
import jax.numpy as jnp
from jax.experimental import pallas as pl
from jax.experimental.pallas import tpu as pltpu

D_MODEL = 64
NUM_HEADS = 8
HEAD_DIM = D_MODEL // NUM_HEADS


def _pick_batch_tile(N, S, max_rows=1024):
    """Largest divisor of N whose block row-count (b*S) is a multiple of 8 and
    <= max_rows, preferring to leave >= 2 grid steps (v7x megacore)."""
    limit = N if N < 2 else max(1, N // 2)
    best = None
    for b in range(1, limit + 1):
        if N % b != 0:
            continue
        rows = b * S
        if rows % 8 != 0 or rows > max_rows:
            continue
        best = b
    if best is None:
        assert (N * S) % 8 == 0, "N*S must be a multiple of 8"
        best = N
    return best


def multi_head_attention(query, key, value, params, *, use_bf16=False, batch_tile=None):
    """query/key/value: (N, S, D_MODEL) float32. Returns (N, S, D_MODEL) float32."""
    N, S, D = query.shape
    assert D == D_MODEL

    inv_scale = 1.0 / (HEAD_DIM ** 0.5)

    # (in, out) weight layout.  Fold the 1/sqrt(head_dim) score scale into the
    # Q projection (weights AND bias) so no per-score multiply is needed.
    wqkv = jnp.stack(
        [params["wq"] * inv_scale, params["wk"], params["wv"]], axis=0)        # (3, D, D)
    wfc = params["wfc"]                                                         # (D, D)
    bias = jnp.stack(
        [params["bq"] * inv_scale, params["bk"], params["bv"], params["bfc"]],
        axis=0).astype(jnp.float32)                                             # (4, D)

    op_dtype = jnp.bfloat16 if use_bf16 else query.dtype
    q2 = query.reshape(N * S, D).astype(op_dtype)
    k2 = key.reshape(N * S, D).astype(op_dtype)
    v2 = value.reshape(N * S, D).astype(op_dtype)
    wqkv = wqkv.astype(op_dtype)
    wfc = wfc.astype(op_dtype)

    BT = batch_tile if batch_tile is not None else _pick_batch_tile(N, S)
    assert N % BT == 0 and (BT * S) % 8 == 0
    rows = BT * S

    def kernel(q_ref, k_ref, v_ref, wqkv_ref, wfc_ref, b_ref, o_ref, ctx_ref):
        b = b_ref[...]  # (4, D) fp32 biases: [bq*inv, bk, bv, bfc]

        # Lane-dense QKV projections: one (rows,64)@(64,64) matmul each, fp32 acc.
        q_p = jnp.dot(q_ref[...], wqkv_ref[0], preferred_element_type=jnp.float32) + b[0:1]
        k_p = jnp.dot(k_ref[...], wqkv_ref[1], preferred_element_type=jnp.float32) + b[1:2]
        v_p = jnp.dot(v_ref[...], wqkv_ref[2], preferred_element_type=jnp.float32) + b[2:3]

        q3 = q_p.reshape(BT, S, D_MODEL)
        k3 = k_p.reshape(BT, S, D_MODEL)
        v3 = v_p.reshape(BT, S, D_MODEL)

        # Per-head attention, batched over the batch tile.  Head h occupies
        # lanes [h*HEAD_DIM, (h+1)*HEAD_DIM) — same ordering PyTorch's
        # view/permute produces, so the ctx scratch IS the head-concat.
        for h in range(NUM_HEADS):
            lo, hi = h * HEAD_DIM, (h + 1) * HEAD_DIM
            q_h = q3[:, :, lo:hi]                      # (BT, S, hd)
            k_h = k3[:, :, lo:hi]
            v_h = v3[:, :, lo:hi]
            s = jnp.einsum('bqd,bkd->bqk', q_h, k_h,
                           preferred_element_type=jnp.float32)   # (BT, S, S)
            m = jnp.max(s, axis=-1, keepdims=True)
            p = jnp.exp(s - m)
            attn = p * pl.reciprocal(jnp.sum(p, axis=-1, keepdims=True), approx=True)
            ctx_ref[:, :, lo:hi] = jnp.einsum('bqk,bkd->bqd', attn, v_h,
                                              preferred_element_type=jnp.float32)

        # Output projection: single (rows,64)@(64,64) matmul over the assembled heads.
        ctx2 = ctx_ref[...].reshape(rows, D_MODEL).astype(wfc_ref.dtype)
        out = jnp.dot(ctx2, wfc_ref[...], preferred_element_type=jnp.float32) + b[3:4]
        o_ref[...] = out.astype(o_ref.dtype)

    out2 = pl.pallas_call(
        kernel,
        out_shape=jax.ShapeDtypeStruct((N * S, D_MODEL), query.dtype),
        grid_spec=pltpu.PrefetchScalarGridSpec(
            num_scalar_prefetch=0,
            grid=(N // BT,),
            in_specs=[
                pl.BlockSpec((rows, D_MODEL), lambda i: (i, 0)),            # query rows
                pl.BlockSpec((rows, D_MODEL), lambda i: (i, 0)),            # key rows
                pl.BlockSpec((rows, D_MODEL), lambda i: (i, 0)),            # value rows
                pl.BlockSpec((3, D_MODEL, D_MODEL), lambda i: (0, 0, 0)),   # Wq|Wk|Wv
                pl.BlockSpec((D_MODEL, D_MODEL), lambda i: (0, 0)),         # Wfc
                pl.BlockSpec((4, D_MODEL), lambda i: (0, 0)),               # biases
            ],
            out_specs=pl.BlockSpec((rows, D_MODEL), lambda i: (i, 0)),
            scratch_shapes=[pltpu.VMEM((BT, S, D_MODEL), jnp.float32)],     # ctx (head concat)
        ),
        compiler_params=pltpu.CompilerParams(
            dimension_semantics=("parallel",)),
    )(q2, k2, v2, wqkv, wfc, bias)

    return out2.reshape(N, S, D_MODEL)


def reference_mha(query, key, value, params):
    """Pure-JAX reference matching the PyTorch forward exactly."""
    N, S, _ = query.shape
    Q = query @ params["wq"] + params["bq"]
    K = key @ params["wk"] + params["bk"]
    V = value @ params["wv"] + params["bv"]
    Q = Q.reshape(N, S, NUM_HEADS, HEAD_DIM).transpose(0, 2, 1, 3)
    K = K.reshape(N, S, NUM_HEADS, HEAD_DIM).transpose(0, 2, 1, 3)
    V = V.reshape(N, S, NUM_HEADS, HEAD_DIM).transpose(0, 2, 1, 3)
    attn = jnp.einsum("nhqd,nhkd->nhqk", Q, K) / (HEAD_DIM ** 0.5)
    attn = jax.nn.softmax(attn, axis=-1)
    x = jnp.einsum("nhqk,nhkd->nhqd", attn, V)
    x = x.transpose(0, 2, 1, 3).reshape(N, S, D_MODEL)
    return x @ params["wfc"] + params["bfc"]


def init_params(key):
    ks = jax.random.split(key, 8)
    scale = 1.0 / (D_MODEL ** 0.5)
    mk = lambda k: jax.random.uniform(k, (D_MODEL, D_MODEL), jnp.float32,
                                      minval=-scale, maxval=scale)
    bk = lambda k: jax.random.uniform(k, (D_MODEL,), jnp.float32,
                                      minval=-scale, maxval=scale)
    return {
        "wq": mk(ks[0]), "bq": bk(ks[1]),
        "wk": mk(ks[2]), "bk": bk(ks[3]),
        "wv": mk(ks[4]), "bv": bk(ks[5]),
        "wfc": mk(ks[6]), "bfc": bk(ks[7]),
    }


if __name__ == "__main__":
    key = jax.random.PRNGKey(0)
    kq, kk, kv, kp = jax.random.split(key, 4)

    N, S = 8, 8
    query = jax.random.normal(kq, (N, S, D_MODEL), jnp.float32)
    keyx = jax.random.normal(kk, (N, S, D_MODEL), jnp.float32)
    value = jax.random.normal(kv, (N, S, D_MODEL), jnp.float32)
    params = init_params(kp)

    # fp32 path (approx reciprocal in the softmax -> 1e-3 tolerance).
    out = multi_head_attention(query, keyx, value, params)
    out = jax.block_until_ready(out)
    ref = reference_mha(query, keyx, value, params)
    assert out.shape == (N, S, D_MODEL)
    assert jnp.allclose(out, ref, atol=1e-3, rtol=1e-3), "fp32 kernel mismatch vs reference"

    # bf16-operand MXU path (v6e/v7x): fp32 accumulation, relaxed tolerance.
    out_bf16 = jax.block_until_ready(
        multi_head_attention(query, keyx, value, params, use_bf16=True))
    assert jnp.allclose(out_bf16, ref, atol=5e-2, rtol=5e-2), "bf16 kernel mismatch vs reference"

    print("KERNEL_OK")
</pallas_src>

<mosaic_0001>
module attributes {stable_mosaic.version = 11 : i64} {
  func.func @kernel(%arg0: i32, %arg1: memref<32x64xf32, #tpu.memory_space<vmem>>, %arg2: memref<32x64xf32, #tpu.memory_space<vmem>>, %arg3: memref<32x64xf32, #tpu.memory_space<vmem>>, %arg4: memref<3x64x64xf32, #tpu.memory_space<vmem>>, %arg5: memref<64x64xf32, #tpu.memory_space<vmem>>, %arg6: memref<4x64xf32, #tpu.memory_space<vmem>>, %arg7: memref<32x64xf32, #tpu.memory_space<vmem>>, %arg8: memref<4x8x64xf32, #tpu.memory_space<vmem>>) attributes {dimension_semantics = [#tpu.dimension_semantics<parallel>], iteration_bounds = array<i64: 2>, scalar_prefetch = 0 : i64, scratch_operands = 1 : i64, tpu.core_type = #tpu.core_type<tc>, window_params = [{transform_indices = @transform_0, window_bounds = array<i64: 32, 64>}, {transform_indices = @transform_1, window_bounds = array<i64: 32, 64>}, {transform_indices = @transform_2, window_bounds = array<i64: 32, 64>}, {pipeline_mode = #tpu.pipeline_mode<synchronous>, transform_indices = @transform_3, window_bounds = array<i64: 3, 64, 64>}, {pipeline_mode = #tpu.pipeline_mode<synchronous>, transform_indices = @transform_4, window_bounds = array<i64: 64, 64>}, {pipeline_mode = #tpu.pipeline_mode<synchronous>, transform_indices = @transform_5, window_bounds = array<i64: 4, 64>}, {transform_indices = @transform_6, window_bounds = array<i64: 32, 64>}]} {
    %c0 = arith.constant 0 : index
    %c0_0 = arith.constant 0 : index
    %0 = vector.load %arg6[%c0, %c0_0] : memref<4x64xf32, #tpu.memory_space<vmem>>, vector<4x64xf32>
    %c0_1 = arith.constant 0 : index
    %c0_2 = arith.constant 0 : index
    %1 = vector.load %arg1[%c0_1, %c0_2] : memref<32x64xf32, #tpu.memory_space<vmem>>, vector<32x64xf32>
    %c0_3 = arith.constant 0 : index
    %c0_4 = arith.constant 0 : index
    %c0_5 = arith.constant 0 : index
    %2 = vector.load %arg4[%c0_3, %c0_4, %c0_5] : memref<3x64x64xf32, #tpu.memory_space<vmem>>, vector<1x64x64xf32>
    %3 = vector.shape_cast %2 : vector<1x64x64xf32> to vector<64x64xf32>
    %cst = arith.constant dense<0.000000e+00> : vector<32x64xf32>
    %4 = tpu.matmul %1, %3, %cst {dimension_numbers = #tpu.dot_dimension_numbers<[1], [0], [0], [1], [0, 0, 1, 1], [], []>} : vector<32x64xf32>, vector<64x64xf32>, vector<32x64xf32> -> vector<32x64xf32>
    %5 = vector.extract_strided_slice %0 {offsets = [0, 0], sizes = [1, 64], strides = [1, 1]} : vector<4x64xf32> to vector<1x64xf32>
    %6 = vector.broadcast %5 : vector<1x64xf32> to vector<32x64xf32>
    %7 = arith.addf %4, %6 : vector<32x64xf32>
    %c0_6 = arith.constant 0 : index
    %c0_7 = arith.constant 0 : index
    %8 = vector.load %arg2[%c0_6, %c0_7] : memref<32x64xf32, #tpu.memory_space<vmem>>, vector<32x64xf32>
    %c1 = arith.constant 1 : index
    %c0_8 = arith.constant 0 : index
    %c0_9 = arith.constant 0 : index
    %9 = vector.load %arg4[%c1, %c0_8, %c0_9] : memref<3x64x64xf32, #tpu.memory_space<vmem>>, vector<1x64x64xf32>
    %10 = vector.shape_cast %9 : vector<1x64x64xf32> to vector<64x64xf32>
    %cst_10 = arith.constant dense<0.000000e+00> : vector<32x64xf32>
    %11 = tpu.matmul %8, %10, %cst_10 {dimension_numbers = #tpu.dot_dimension_numbers<[1], [0], [0], [1], [0, 0, 1, 1], [], []>} : vector<32x64xf32>, vector<64x64xf32>, vector<32x64xf32> -> vector<32x64xf32>
    %12 = vector.extract_strided_slice %0 {offsets = [1, 0], sizes = [1, 64], strides = [1, 1]} : vector<4x64xf32> to vector<1x64xf32>
    %13 = vector.broadcast %12 : vector<1x64xf32> to vector<32x64xf32>
    %14 = arith.addf %11, %13 : vector<32x64xf32>
    %c0_11 = arith.constant 0 : index
    %c0_12 = arith.constant 0 : index
    %15 = vector.load %arg3[%c0_11, %c0_12] : memref<32x64xf32, #tpu.memory_space<vmem>>, vector<32x64xf32>
    %c2 = arith.constant 2 : index
    %c0_13 = arith.constant 0 : index
    %c0_14 = arith.constant 0 : index
    %16 = vector.load %arg4[%c2, %c0_13, %c0_14] : memref<3x64x64xf32, #tpu.memory_space<vmem>>, vector<1x64x64xf32>
    %17 = vector.shape_cast %16 : vector<1x64x64xf32> to vector<64x64xf32>
    %cst_15 = arith.constant dense<0.000000e+00> : vector<32x64xf32>
    %18 = tpu.matmul %15, %17, %cst_15 {dimension_numbers = #tpu.dot_dimension_numbers<[1], [0], [0], [1], [0, 0, 1, 1], [], []>} : vector<32x64xf32>, vector<64x64xf32>, vector<32x64xf32> -> vector<32x64xf32>
    %19 = vector.extract_strided_slice %0 {offsets = [2, 0], sizes = [1, 64], strides = [1, 1]} : vector<4x64xf32> to vector<1x64xf32>
    %20 = vector.broadcast %19 : vector<1x64xf32> to vector<32x64xf32>
    %21 = arith.addf %18, %20 : vector<32x64xf32>
    %22 = vector.shape_cast %7 : vector<32x64xf32> to vector<4x8x64xf32>
    %23 = vector.shape_cast %14 : vector<32x64xf32> to vector<4x8x64xf32>
    %24 = vector.shape_cast %21 : vector<32x64xf32> to vector<4x8x64xf32>
    %25 = vector.extract_strided_slice %22 {offsets = [0, 0, 0], sizes = [4, 8, 8], strides = [1, 1, 1]} : vector<4x8x64xf32> to vector<4x8x8xf32>
    %26 = vector.extract_strided_slice %23 {offsets = [0, 0, 0], sizes = [4, 8, 8], strides = [1, 1, 1]} : vector<4x8x64xf32> to vector<4x8x8xf32>
    %27 = vector.extract_strided_slice %24 {offsets = [0, 0, 0], sizes = [4, 8, 8], strides = [1, 1, 1]} : vector<4x8x64xf32> to vector<4x8x8xf32>
    "tpu.trace_start"() <{level = 10 : i32, message = "bqd,bkd->bqk"}> : () -> ()
    %cst_16 = arith.constant dense<0.000000e+00> : vector<4x8x8xf32>
    %28 = tpu.matmul %25, %26, %cst_16 {dimension_numbers = #tpu.dot_dimension_numbers<[2], [2], [1], [1], [0, 0, 0, 1, 1, 1], [0], [0]>} : vector<4x8x8xf32>, vector<4x8x8xf32>, vector<4x8x8xf32> -> vector<4x8x8xf32>
    "tpu.trace_stop"() : () -> ()
    %cst_17 = arith.constant dense<0xFF800000> : vector<4x8xf32>
    %29 = vector.multi_reduction <maximumf>, %28, %cst_17 [2] : vector<4x8x8xf32> to vector<4x8xf32>
    %30 = vector.shape_cast %29 : vector<4x8xf32> to vector<4x8x1xf32>
    %31 = vector.broadcast %30 : vector<4x8x1xf32> to vector<4x8x8xf32>
    %32 = arith.subf %28, %31 : vector<4x8x8xf32>
    %33 = math.exp %32 : vector<4x8x8xf32>
    %cst_18 = arith.constant dense<0.000000e+00> : vector<4x8xf32>
    %34 = vector.multi_reduction <add>, %33, %cst_18 [2] : vector<4x8x8xf32> to vector<4x8xf32>
    %35 = vector.shape_cast %34 : vector<4x8xf32> to vector<4x8x1xf32>
    %36 = tpu.reciprocal %35 {approx = true} : vector<4x8x1xf32> -> vector<4x8x1xf32>
    %37 = vector.broadcast %36 : vector<4x8x1xf32> to vector<4x8x8xf32>
    %38 = arith.mulf %33, %37 : vector<4x8x8xf32>
    "tpu.trace_start"() <{level = 10 : i32, message = "bqk,bkd->bqd"}> : () -> ()
    %cst_19 = arith.constant dense<0.000000e+00> : vector<4x8x8xf32>
    %39 = tpu.matmul %38, %27, %cst_19 {dimension_numbers = #tpu.dot_dimension_numbers<[2], [1], [1], [2], [0, 0, 0, 1, 1, 2], [0], [0]>} : vector<4x8x8xf32>, vector<4x8x8xf32>, vector<4x8x8xf32> -> vector<4x8x8xf32>
    "tpu.trace_stop"() : () -> ()
    %c0_20 = arith.constant 0 : index
    %c0_21 = arith.constant 0 : index
    %c0_22 = arith.constant 0 : index
    %40 = vector.load %arg8[%c0_20, %c0_21, %c0_22] : memref<4x8x64xf32, #tpu.memory_space<vmem>>, vector<4x8x8xf32>
    tpu.vector_store %arg8[%c0_20, %c0_21, %c0_22], %39 {strides = array<i32>} : memref<4x8x64xf32, #tpu.memory_space<vmem>>, vector<4x8x8xf32>,
    %41 = vector.extract_strided_slice %22 {offsets = [0, 0, 8], sizes = [4, 8, 8], strides = [1, 1, 1]} : vector<4x8x64xf32> to vector<4x8x8xf32>
    %42 = vector.extract_strided_slice %23 {offsets = [0, 0, 8], sizes = [4, 8, 8], strides = [1, 1, 1]} : vector<4x8x64xf32> to vector<4x8x8xf32>
    %43 = vector.extract_strided_slice %24 {offsets = [0, 0, 8], sizes = [4, 8, 8], strides = [1, 1, 1]} : vector<4x8x64xf32> to vector<4x8x8xf32>
    "tpu.trace_start"() <{level = 10 : i32, message = "bqd,bkd->bqk"}> : () -> ()
    %cst_23 = arith.constant dense<0.000000e+00> : vector<4x8x8xf32>
    %44 = tpu.matmul %41, %42, %cst_23 {dimension_numbers = #tpu.dot_dimension_numbers<[2], [2], [1], [1], [0, 0, 0, 1, 1, 1], [0], [0]>} : vector<4x8x8xf32>, vector<4x8x8xf32>, vector<4x8x8xf32> -> vector<4x8x8xf32>
    "tpu.trace_stop"() : () -> ()
    %cst_24 = arith.constant dense<0xFF800000> : vector<4x8xf32>
    %45 = vector.multi_reduction <maximumf>, %44, %cst_24 [2] : vector<4x8x8xf32> to vector<4x8xf32>
    %46 = vector.shape_cast %45 : vector<4x8xf32> to vector<4x8x1xf32>
    %47 = vector.broadcast %46 : vector<4x8x1xf32> to vector<4x8x8xf32>
    %48 = arith.subf %44, %47 : vector<4x8x8xf32>
    %49 = math.exp %48 : vector<4x8x8xf32>
    %cst_25 = arith.constant dense<0.000000e+00> : vector<4x8xf32>
    %50 = vector.multi_reduction <add>, %49, %cst_25 [2] : vector<4x8x8xf32> to vector<4x8xf32>
    %51 = vector.shape_cast %50 : vector<4x8xf32> to vector<4x8x1xf32>
    %52 = tpu.reciprocal %51 {approx = true} : vector<4x8x1xf32> -> vector<4x8x1xf32>
    %53 = vector.broadcast %52 : vector<4x8x1xf32> to vector<4x8x8xf32>
    %54 = arith.mulf %49, %53 : vector<4x8x8xf32>
    "tpu.trace_start"() <{level = 10 : i32, message = "bqk,bkd->bqd"}> : () -> ()
    %cst_26 = arith.constant dense<0.000000e+00> : vector<4x8x8xf32>
    %55 = tpu.matmul %54, %43, %cst_26 {dimension_numbers = #tpu.dot_dimension_numbers<[2], [1], [1], [2], [0, 0, 0, 1, 1, 2], [0], [0]>} : vector<4x8x8xf32>, vector<4x8x8xf32>, vector<4x8x8xf32> -> vector<4x8x8xf32>
    "tpu.trace_stop"() : () -> ()
    %c0_27 = arith.constant 0 : index
    %c0_28 = arith.constant 0 : index
    %c8 = arith.constant 8 : index
    %56 = vector.load %arg8[%c0_27, %c0_28, %c8] : memref<4x8x64xf32, #tpu.memory_space<vmem>>, vector<4x8x8xf32>
    tpu.vector_store %arg8[%c0_27, %c0_28, %c8], %55 {strides = array<i32>} : memref<4x8x64xf32, #tpu.memory_space<vmem>>, vector<4x8x8xf32>,
    %57 = vector.extract_strided_slice %22 {offsets = [0, 0, 16], sizes = [4, 8, 8], strides = [1, 1, 1]} : vector<4x8x64xf32> to vector<4x8x8xf32>
    %58 = vector.extract_strided_slice %23 {offsets = [0, 0, 16], sizes = [4, 8, 8], strides = [1, 1, 1]} : vector<4x8x64xf32> to vector<4x8x8xf32>
    %59 = vector.extract_strided_slice %24 {offsets = [0, 0, 16], sizes = [4, 8, 8], strides = [1, 1, 1]} : vector<4x8x64xf32> to vector<4x8x8xf32>
    "tpu.trace_start"() <{level = 10 : i32, message = "bqd,bkd->bqk"}> : () -> ()
    %cst_29 = arith.constant dense<0.000000e+00> : vector<4x8x8xf32>
    %60 = tpu.matmul %57, %58, %cst_29 {dimension_numbers = #tpu.dot_dimension_numbers<[2], [2], [1], [1], [0, 0, 0, 1, 1, 1], [0], [0]>} : vector<4x8x8xf32>, vector<4x8x8xf32>, vector<4x8x8xf32> -> vector<4x8x8xf32>
    "tpu.trace_stop"() : () -> ()
    %cst_30 = arith.constant dense<0xFF800000> : vector<4x8xf32>
    %61 = vector.multi_reduction <maximumf>, %60, %cst_30 [2] : vector<4x8x8xf32> to vector<4x8xf32>
    %62 = vector.shape_cast %61 : vector<4x8xf32> to vector<4x8x1xf32>
    %63 = vector.broadcast %62 : vector<4x8x1xf32> to vector<4x8x8xf32>
    %64 = arith.subf %60, %63 : vector<4x8x8xf32>
    %65 = math.exp %64 : vector<4x8x8xf32>
    %cst_31 = arith.constant dense<0.000000e+00> : vector<4x8xf32>
    %66 = vector.multi_reduction <add>, %65, %cst_31 [2] : vector<4x8x8xf32> to vector<4x8xf32>
    %67 = vector.shape_cast %66 : vector<4x8xf32> to vector<4x8x1xf32>
    %68 = tpu.reciprocal %67 {approx = true} : vector<4x8x1xf32> -> vector<4x8x1xf32>
    %69 = vector.broadcast %68 : vector<4x8x1xf32> to vector<4x8x8xf32>
    %70 = arith.mulf %65, %69 : vector<4x8x8xf32>
    "tpu.trace_start"() <{level = 10 : i32, message = "bqk,bkd->bqd"}> : () -> ()
    %cst_32 = arith.constant dense<0.000000e+00> : vector<4x8x8xf32>
    %71 = tpu.matmul %70, %59, %cst_32 {dimension_numbers = #tpu.dot_dimension_numbers<[2], [1], [1], [2], [0, 0, 0, 1, 1, 2], [0], [0]>} : vector<4x8x8xf32>, vector<4x8x8xf32>, vector<4x8x8xf32> -> vector<4x8x8xf32>
    "tpu.trace_stop"() : () -> ()
    %c0_33 = arith.constant 0 : index
    %c0_34 = arith.constant 0 : index
    %c16 = arith.constant 16 : index
    %72 = vector.load %arg8[%c0_33, %c0_34, %c16] : memref<4x8x64xf32, #tpu.memory_space<vmem>>, vector<4x8x8xf32>
    tpu.vector_store %arg8[%c0_33, %c0_34, %c16], %71 {strides = array<i32>} : memref<4x8x64xf32, #tpu.memory_space<vmem>>, vector<4x8x8xf32>,
    %73 = vector.extract_strided_slice %22 {offsets = [0, 0, 24], sizes = [4, 8, 8], strides = [1, 1, 1]} : vector<4x8x64xf32> to vector<4x8x8xf32>
    %74 = vector.extract_strided_slice %23 {offsets = [0, 0, 24], sizes = [4, 8, 8], strides = [1, 1, 1]} : vector<4x8x64xf32> to vector<4x8x8xf32>
    %75 = vector.extract_strided_slice %24 {offsets = [0, 0, 24], sizes = [4, 8, 8], strides = [1, 1, 1]} : vector<4x8x64xf32> to vector<4x8x8xf32>
    "tpu.trace_start"() <{level = 10 : i32, message = "bqd,bkd->bqk"}> : () -> ()
    %cst_35 = arith.constant dense<0.000000e+00> : vector<4x8x8xf32>
    %76 = tpu.matmul %73, %74, %cst_35 {dimension_numbers = #tpu.dot_dimension_numbers<[2], [2], [1], [1], [0, 0, 0, 1, 1, 1], [0], [0]>} : vector<4x8x8xf32>, vector<4x8x8xf32>, vector<4x8x8xf32> -> vector<4x8x8xf32>
    "tpu.trace_stop"() : () -> ()
    %cst_36 = arith.constant dense<0xFF800000> : vector<4x8xf32>
    %77 = vector.multi_reduction <maximumf>, %76, %cst_36 [2] : vector<4x8x8xf32> to vector<4x8xf32>
    %78 = vector.shape_cast %77 : vector<4x8xf32> to vector<4x8x1xf32>
    %79 = vector.broadcast %78 : vector<4x8x1xf32> to vector<4x8x8xf32>
    %80 = arith.subf %76, %79 : vector<4x8x8xf32>
    %81 = math.exp %80 : vector<4x8x8xf32>
    %cst_37 = arith.constant dense<0.000000e+00> : vector<4x8xf32>
    %82 = vector.multi_reduction <add>, %81, %cst_37 [2] : vector<4x8x8xf32> to vector<4x8xf32>
    %83 = vector.shape_cast %82 : vector<4x8xf32> to vector<4x8x1xf32>
    %84 = tpu.reciprocal %83 {approx = true} : vector<4x8x1xf32> -> vector<4x8x1xf32>
    %85 = vector.broadcast %84 : vector<4x8x1xf32> to vector<4x8x8xf32>
    %86 = arith.mulf %81, %85 : vector<4x8x8xf32>
    "tpu.trace_start"() <{level = 10 : i32, message = "bqk,bkd->bqd"}> : () -> ()
    %cst_38 = arith.constant dense<0.000000e+00> : vector<4x8x8xf32>
    %87 = tpu.matmul %86, %75, %cst_38 {dimension_numbers = #tpu.dot_dimension_numbers<[2], [1], [1], [2], [0, 0, 0, 1, 1, 2], [0], [0]>} : vector<4x8x8xf32>, vector<4x8x8xf32>, vector<4x8x8xf32> -> vector<4x8x8xf32>
    "tpu.trace_stop"() : () -> ()
    %c0_39 = arith.constant 0 : index
    %c0_40 = arith.constant 0 : index
    %c24 = arith.constant 24 : index
    %88 = vector.load %arg8[%c0_39, %c0_40, %c24] : memref<4x8x64xf32, #tpu.memory_space<vmem>>, vector<4x8x8xf32>
    tpu.vector_store %arg8[%c0_39, %c0_40, %c24], %87 {strides = array<i32>} : memref<4x8x64xf32, #tpu.memory_space<vmem>>, vector<4x8x8xf32>,
    %89 = vector.extract_strided_slice %22 {offsets = [0, 0, 32], sizes = [4, 8, 8], strides = [1, 1, 1]} : vector<4x8x64xf32> to vector<4x8x8xf32>
    %90 = vector.extract_strided_slice %23 {offsets = [0, 0, 32], sizes = [4, 8, 8], strides = [1, 1, 1]} : vector<4x8x64xf32> to vector<4x8x8xf32>
    %91 = vector.extract_strided_slice %24 {offsets = [0, 0, 32], sizes = [4, 8, 8], strides = [1, 1, 1]} : vector<4x8x64xf32> to vector<4x8x8xf32>
    "tpu.trace_start"() <{level = 10 : i32, message = "bqd,bkd->bqk"}> : () -> ()
    %cst_41 = arith.constant dense<0.000000e+00> : vector<4x8x8xf32>
    %92 = tpu.matmul %89, %90, %cst_41 {dimension_numbers = #tpu.dot_dimension_numbers<[2], [2], [1], [1], [0, 0, 0, 1, 1, 1], [0], [0]>} : vector<4x8x8xf32>, vector<4x8x8xf32>, vector<4x8x8xf32> -> vector<4x8x8xf32>
    "tpu.trace_stop"() : () -> ()
    %cst_42 = arith.constant dense<0xFF800000> : vector<4x8xf32>
    %93 = vector.multi_reduction <maximumf>, %92, %cst_42 [2] : vector<4x8x8xf32> to vector<4x8xf32>
    %94 = vector.shape_cast %93 : vector<4x8xf32> to vector<4x8x1xf32>
    %95 = vector.broadcast %94 : vector<4x8x1xf32> to vector<4x8x8xf32>
    %96 = arith.subf %92, %95 : vector<4x8x8xf32>
    %97 = math.exp %96 : vector<4x8x8xf32>
    %cst_43 = arith.constant dense<0.000000e+00> : vector<4x8xf32>
    %98 = vector.multi_reduction <add>, %97, %cst_43 [2] : vector<4x8x8xf32> to vector<4x8xf32>
    %99 = vector.shape_cast %98 : vector<4x8xf32> to vector<4x8x1xf32>
    %100 = tpu.reciprocal %99 {approx = true} : vector<4x8x1xf32> -> vector<4x8x1xf32>
    %101 = vector.broadcast %100 : vector<4x8x1xf32> to vector<4x8x8xf32>
    %102 = arith.mulf %97, %101 : vector<4x8x8xf32>
    "tpu.trace_start"() <{level = 10 : i32, message = "bqk,bkd->bqd"}> : () -> ()
    %cst_44 = arith.constant dense<0.000000e+00> : vector<4x8x8xf32>
    %103 = tpu.matmul %102, %91, %cst_44 {dimension_numbers = #tpu.dot_dimension_numbers<[2], [1], [1], [2], [0, 0, 0, 1, 1, 2], [0], [0]>} : vector<4x8x8xf32>, vector<4x8x8xf32>, vector<4x8x8xf32> -> vector<4x8x8xf32>
    "tpu.trace_stop"() : () -> ()
    %c0_45 = arith.constant 0 : index
    %c0_46 = arith.constant 0 : index
    %c32 = arith.constant 32 : index
    %104 = vector.load %arg8[%c0_45, %c0_46, %c32] : memref<4x8x64xf32, #tpu.memory_space<vmem>>, vector<4x8x8xf32>
    tpu.vector_store %arg8[%c0_45, %c0_46, %c32], %103 {strides = array<i32>} : memref<4x8x64xf32, #tpu.memory_space<vmem>>, vector<4x8x8xf32>,
    %105 = vector.extract_strided_slice %22 {offsets = [0, 0, 40], sizes = [4, 8, 8], strides = [1, 1, 1]} : vector<4x8x64xf32> to vector<4x8x8xf32>
    %106 = vector.extract_strided_slice %23 {offsets = [0, 0, 40], sizes = [4, 8, 8], strides = [1, 1, 1]} : vector<4x8x64xf32> to vector<4x8x8xf32>
    %107 = vector.extract_strided_slice %24 {offsets = [0, 0, 40], sizes = [4, 8, 8], strides = [1, 1, 1]} : vector<4x8x64xf32> to vector<4x8x8xf32>
    "tpu.trace_start"() <{level = 10 : i32, message = "bqd,bkd->bqk"}> : () -> ()
    %cst_47 = arith.constant dense<0.000000e+00> : vector<4x8x8xf32>
    %108 = tpu.matmul %105, %106, %cst_47 {dimension_numbers = #tpu.dot_dimension_numbers<[2], [2], [1], [1], [0, 0, 0, 1, 1, 1], [0], [0]>} : vector<4x8x8xf32>, vector<4x8x8xf32>, vector<4x8x8xf32> -> vector<4x8x8xf32>
    "tpu.trace_stop"() : () -> ()
    %cst_48 = arith.constant dense<0xFF800000> : vector<4x8xf32>
    %109 = vector.multi_reduction <maximumf>, %108, %cst_48 [2] : vector<4x8x8xf32> to vector<4x8xf32>
    %110 = vector.shape_cast %109 : vector<4x8xf32> to vector<4x8x1xf32>
    %111 = vector.broadcast %110 : vector<4x8x1xf32> to vector<4x8x8xf32>
    %112 = arith.subf %108, %111 : vector<4x8x8xf32>
    %113 = math.exp %112 : vector<4x8x8xf32>
    %cst_49 = arith.constant dense<0.000000e+00> : vector<4x8xf32>
    %114 = vector.multi_reduction <add>, %113, %cst_49 [2] : vector<4x8x8xf32> to vector<4x8xf32>
    %115 = vector.shape_cast %114 : vector<4x8xf32> to vector<4x8x1xf32>
    %116 = tpu.reciprocal %115 {approx = true} : vector<4x8x1xf32> -> vector<4x8x1xf32>
    %117 = vector.broadcast %116 : vector<4x8x1xf32> to vector<4x8x8xf32>
    %118 = arith.mulf %113, %117 : vector<4x8x8xf32>
    "tpu.trace_start"() <{level = 10 : i32, message = "bqk,bkd->bqd"}> : () -> ()
    %cst_50 = arith.constant dense<0.000000e+00> : vector<4x8x8xf32>
    %119 = tpu.matmul %118, %107, %cst_50 {dimension_numbers = #tpu.dot_dimension_numbers<[2], [1], [1], [2], [0, 0, 0, 1, 1, 2], [0], [0]>} : vector<4x8x8xf32>, vector<4x8x8xf32>, vector<4x8x8xf32> -> vector<4x8x8xf32>
    "tpu.trace_stop"() : () -> ()
    %c0_51 = arith.constant 0 : index
    %c0_52 = arith.constant 0 : index
    %c40 = arith.constant 40 : index
    %120 = vector.load %arg8[%c0_51, %c0_52, %c40] : memref<4x8x64xf32, #tpu.memory_space<vmem>>, vector<4x8x8xf32>
    tpu.vector_store %arg8[%c0_51, %c0_52, %c40], %119 {strides = array<i32>} : memref<4x8x64xf32, #tpu.memory_space<vmem>>, vector<4x8x8xf32>,
    %121 = vector.extract_strided_slice %22 {offsets = [0, 0, 48], sizes = [4, 8, 8], strides = [1, 1, 1]} : vector<4x8x64xf32> to vector<4x8x8xf32>
    %122 = vector.extract_strided_slice %23 {offsets = [0, 0, 48], sizes = [4, 8, 8], strides = [1, 1, 1]} : vector<4x8x64xf32> to vector<4x8x8xf32>
    %123 = vector.extract_strided_slice %24 {offsets = [0, 0, 48], sizes = [4, 8, 8], strides = [1, 1, 1]} : vector<4x8x64xf32> to vector<4x8x8xf32>
    "tpu.trace_start"() <{level = 10 : i32, message = "bqd,bkd->bqk"}> : () -> ()
    %cst_53 = arith.constant dense<0.000000e+00> : vector<4x8x8xf32>
    %124 = tpu.matmul %121, %122, %cst_53 {dimension_numbers = #tpu.dot_dimension_numbers<[2], [2], [1], [1], [0, 0, 0, 1, 1, 1], [0], [0]>} : vector<4x8x8xf32>, vector<4x8x8xf32>, vector<4x8x8xf32> -> vector<4x8x8xf32>
    "tpu.trace_stop"() : () -> ()
    %cst_54 = arith.constant dense<0xFF800000> : vector<4x8xf32>
    %125 = vector.multi_reduction <maximumf>, %124, %cst_54 [2] : vector<4x8x8xf32> to vector<4x8xf32>
    %126 = vector.shape_cast %125 : vector<4x8xf32> to vector<4x8x1xf32>
    %127 = vector.broadcast %126 : vector<4x8x1xf32> to vector<4x8x8xf32>
    %128 = arith.subf %124, %127 : vector<4x8x8xf32>
    %129 = math.exp %128 : vector<4x8x8xf32>
    %cst_55 = arith.constant dense<0.000000e+00> : vector<4x8xf32>
    %130 = vector.multi_reduction <add>, %129, %cst_55 [2] : vector<4x8x8xf32> to vector<4x8xf32>
    %131 = vector.shape_cast %130 : vector<4x8xf32> to vector<4x8x1xf32>
    %132 = tpu.reciprocal %131 {approx = true} : vector<4x8x1xf32> -> vector<4x8x1xf32>
    %133 = vector.broadcast %132 : vector<4x8x1xf32> to vector<4x8x8xf32>
    %134 = arith.mulf %129, %133 : vector<4x8x8xf32>
    "tpu.trace_start"() <{level = 10 : i32, message = "bqk,bkd->bqd"}> : () -> ()
    %cst_56 = arith.constant dense<0.000000e+00> : vector<4x8x8xf32>
    %135 = tpu.matmul %134, %123, %cst_56 {dimension_numbers = #tpu.dot_dimension_numbers<[2], [1], [1], [2], [0, 0, 0, 1, 1, 2], [0], [0]>} : vector<4x8x8xf32>, vector<4x8x8xf32>, vector<4x8x8xf32> -> vector<4x8x8xf32>
    "tpu.trace_stop"() : () -> ()
    %c0_57 = arith.constant 0 : index
    %c0_58 = arith.constant 0 : index
    %c48 = arith.constant 48 : index
    %136 = vector.load %arg8[%c0_57, %c0_58, %c48] : memref<4x8x64xf32, #tpu.memory_space<vmem>>, vector<4x8x8xf32>
    tpu.vector_store %arg8[%c0_57, %c0_58, %c48], %135 {strides = array<i32>} : memref<4x8x64xf32, #tpu.memory_space<vmem>>, vector<4x8x8xf32>,
    %137 = vector.extract_strided_slice %22 {offsets = [0, 0, 56], sizes = [4, 8, 8], strides = [1, 1, 1]} : vector<4x8x64xf32> to vector<4x8x8xf32>
    %138 = vector.extract_strided_slice %23 {offsets = [0, 0, 56], sizes = [4, 8, 8], strides = [1, 1, 1]} : vector<4x8x64xf32> to vector<4x8x8xf32>
    %139 = vector.extract_strided_slice %24 {offsets = [0, 0, 56], sizes = [4, 8, 8], strides = [1, 1, 1]} : vector<4x8x64xf32> to vector<4x8x8xf32>
    "tpu.trace_start"() <{level = 10 : i32, message = "bqd,bkd->bqk"}> : () -> ()
    %cst_59 = arith.constant dense<0.000000e+00> : vector<4x8x8xf32>
    %140 = tpu.matmul %137, %138, %cst_59 {dimension_numbers = #tpu.dot_dimension_numbers<[2], [2], [1], [1], [0, 0, 0, 1, 1, 1], [0], [0]>} : vector<4x8x8xf32>, vector<4x8x8xf32>, vector<4x8x8xf32> -> vector<4x8x8xf32>
    "tpu.trace_stop"() : () -> ()
    %cst_60 = arith.constant dense<0xFF800000> : vector<4x8xf32>
    %141 = vector.multi_reduction <maximumf>, %140, %cst_60 [2] : vector<4x8x8xf32> to vector<4x8xf32>
    %142 = vector.shape_cast %141 : vector<4x8xf32> to vector<4x8x1xf32>
    %143 = vector.broadcast %142 : vector<4x8x1xf32> to vector<4x8x8xf32>
    %144 = arith.subf %140, %143 : vector<4x8x8xf32>
    %145 = math.exp %144 : vector<4x8x8xf32>
    %cst_61 = arith.constant dense<0.000000e+00> : vector<4x8xf32>
    %146 = vector.multi_reduction <add>, %145, %cst_61 [2] : vector<4x8x8xf32> to vector<4x8xf32>
    %147 = vector.shape_cast %146 : vector<4x8xf32> to vector<4x8x1xf32>
    %148 = tpu.reciprocal %147 {approx = true} : vector<4x8x1xf32> -> vector<4x8x1xf32>
    %149 = vector.broadcast %148 : vector<4x8x1xf32> to vector<4x8x8xf32>
    %150 = arith.mulf %145, %149 : vector<4x8x8xf32>
    "tpu.trace_start"() <{level = 10 : i32, message = "bqk,bkd->bqd"}> : () -> ()
    %cst_62 = arith.constant dense<0.000000e+00> : vector<4x8x8xf32>
    %151 = tpu.matmul %150, %139, %cst_62 {dimension_numbers = #tpu.dot_dimension_numbers<[2], [1], [1], [2], [0, 0, 0, 1, 1, 2], [0], [0]>} : vector<4x8x8xf32>, vector<4x8x8xf32>, vector<4x8x8xf32> -> vector<4x8x8xf32>
    "tpu.trace_stop"() : () -> ()
    %c0_63 = arith.constant 0 : index
    %c0_64 = arith.constant 0 : index
    %c56 = arith.constant 56 : index
    %152 = vector.load %arg8[%c0_63, %c0_64, %c56] : memref<4x8x64xf32, #tpu.memory_space<vmem>>, vector<4x8x8xf32>
    tpu.vector_store %arg8[%c0_63, %c0_64, %c56], %151 {strides = array<i32>} : memref<4x8x64xf32, #tpu.memory_space<vmem>>, vector<4x8x8xf32>,
    %c0_65 = arith.constant 0 : index
    %c0_66 = arith.constant 0 : index
    %c0_67 = arith.constant 0 : index
    %153 = vector.load %arg8[%c0_65, %c0_66, %c0_67] : memref<4x8x64xf32, #tpu.memory_space<vmem>>, vector<4x8x64xf32>
    %154 = vector.shape_cast %153 : vector<4x8x64xf32> to vector<32x64xf32>
    %c0_68 = arith.constant 0 : index
    %c0_69 = arith.constant 0 : index
    %155 = vector.load %arg5[%c0_68, %c0_69] : memref<64x64xf32, #tpu.memory_space<vmem>>, vector<64x64xf32>
    %cst_70 = arith.constant dense<0.000000e+00> : vector<32x64xf32>
    %156 = tpu.matmul %154, %155, %cst_70 {dimension_numbers = #tpu.dot_dimension_numbers<[1], [0], [0], [1], [0, 0, 1, 1], [], []>} : vector<32x64xf32>, vector<64x64xf32>, vector<32x64xf32> -> vector<32x64xf32>
    %157 = vector.extract_strided_slice %0 {offsets = [3, 0], sizes = [1, 64], strides = [1, 1]} : vector<4x64xf32> to vector<1x64xf32>
    %158 = vector.broadcast %157 : vector<1x64xf32> to vector<32x64xf32>
    %159 = arith.addf %156, %158 : vector<32x64xf32>
    %c0_71 = arith.constant 0 : index
    %c0_72 = arith.constant 0 : index
    %160 = vector.load %arg7[%c0_71, %c0_72] : memref<32x64xf32, #tpu.memory_space<vmem>>, vector<32x64xf32>
    tpu.vector_store %arg7[%c0_71, %c0_72], %159 {strides = array<i32>} : memref<32x64xf32, #tpu.memory_space<vmem>>, vector<32x64xf32>,
    return
  }
  func.func @transform_0(%arg0: i32) -> (i32, i32) {
    %c0_i32 = arith.constant 0 : i32
    %c0_i32_0 = arith.constant 0 : i32
    return %arg0, %c0_i32 : i32, i32
  }
  func.func @transform_1(%arg0: i32) -> (i32, i32) {
    %c0_i32 = arith.constant 0 : i32
    %c0_i32_0 = arith.constant 0 : i32
    return %arg0, %c0_i32 : i32, i32
  }
  func.func @transform_2(%arg0: i32) -> (i32, i32) {
    %c0_i32 = arith.constant 0 : i32
    %c0_i32_0 = arith.constant 0 : i32
    return %arg0, %c0_i32 : i32, i32
  }
  func.func @transform_3(%arg0: i32) -> (i32, i32, i32) {
    %c0_i32 = arith.constant 0 : i32
    %c0_i32_0 = arith.constant 0 : i32
    %c0_i32_1 = arith.constant 0 : i32
    %c0_i32_2 = arith.constant 0 : i32
    return %c0_i32, %c0_i32_0, %c0_i32_1 : i32, i32, i32
  }
  func.func @transform_4(%arg0: i32) -> (i32, i32) {
    %c0_i32 = arith.constant 0 : i32
    %c0_i32_0 = arith.constant 0 : i32
    %c0_i32_1 = arith.constant 0 : i32
    return %c0_i32, %c0_i32_0 : i32, i32
  }
  func.func @transform_5(%arg0: i32) -> (i32, i32) {
    %c0_i32 = arith.constant 0 : i32
    %c0_i32_0 = arith.constant 0 : i32
    %c0_i32_1 = arith.constant 0 : i32
    return %c0_i32, %c0_i32_0 : i32, i32
  }
  func.func @transform_6(%arg0: i32) -> (i32, i32) {
    %c0_i32 = arith.constant 0 : i32
    %c0_i32_0 = arith.constant 0 : i32
    return %arg0, %c0_i32 : i32, i32
  }
}

</mosaic_0001>

<bundles_post_ra>
// kernel: tpu_custom_call.1
= control target key start
LH: loop header
LB: loop body
LE: loop exit
PB: predicated region body
PF: predicated region fallthrough
CT: control target
= control target key end

     0   :  { %s8668_s0 = inlined_call_operand.hbm [shape: f32[64,64], index: 0, kind: input, shape index: {}]   ;;  %s8669_s1 = inlined_call_operand.hbm [shape: f32[64,64], index: 1, kind: input, shape index: {}]   ;;  %s8670_s2 = inlined_call_operand.hbm [shape: f32[64,64], index: 2, kind: input, shape index: {}]   ;;  %s8671_s3 = inlined_call_operand.hbm [shape: f32[3,64,64], index: 3, kind: input, shape index: {}]   ;;  %s8672_s4 = inlined_call_operand.hbm [shape: f32[64,64], index: 4, kind: input, shape index: {}]   ;;  %s8673_s5 = inlined_call_operand.vmem [shape: f32[4,64], index: 5, kind: input, shape index: {}]   ;;  %s8674_s6 = inlined_call_operand.hbm [shape: f32[64,64], index: 6, kind: output, shape index: {}]  }
   0x1   :  { %8689 = sst [smem:[#allocation19_spill]] %s8669_s1 }
   0x2   :  { %8690 = sst [smem:[#allocation20_spill]] %s8671_s3 }
   0x3   :  { %8691 = sst [smem:[#allocation21_spill]] %s8672_s4 }
   0x4   :  { %11 = vsyncpa [#allocation4], 0 }
   0x5   :  { %13 = vsyncpa [#allocation4 + $0x1], 0 }
   0x6   :  { %14 = vsyncpa [#allocation7], 0 }
   0x7   :  { %16 = vsyncpa [#allocation7 + $0x1], 0 }
   0x8   :  { %17 = vsyncpa [#allocation10], 0 }
   0x9   :  { %18 = vsyncpa [#allocation5], 0 }
   0xa   :  { %20 = vsyncpa [#allocation5 + $0x1], 0  ;;  %s7626_s21 = smov 0   ;;  %s7628_s22 = smov 0  }
   0xb   :  { %s7630_s23 = smov 0   ;;  %s7632_s24 = smov 0  }
   0xc LB: > { %s7647_s25 = sadd.s32 4294967295, %s7564_s24   ;;  %s6405_s26 = sadd.s32 4294967294, %s7564_s24   ;;  %s7564_s24 = sphi %s7632_s24, %s8717_s24   ;;  %s7560_s23 = sphi %s7630_s23, %s8721_s23   ;;  %s7556_s22 = sphi %s7628_s22, %s8720_s22   ;;  %s7552_s21 = sphi %s7626_s21, %s8719_s21  }
   0xd   : > { %s7651_s27 = sadd.s32 1, %s7564_s24   ;;  %s33_s28 = sadd.s32 1, %s7560_s23 }
   0xe   : > { %8692 = sst [smem:[#allocation17_spill]] %s7651_s27  ;;  %s30_s29 = ssub.s32 %s7564_s24, %s7651_s27 }
   0xf   : > { %p40_p0 = scmp.ne.s32.totalorder %s7560_s23, %s7556_s22  ;;  %p31_p1 = scmp.eq.s32.totalorder %s30_s29, 0 }
  0x10   : > { %p41_p2 = scmp.eq.s32.totalorder %s7564_s24, 0  ;;  %p46_p3 = scmp.ne.s32.totalorder %s7556_s22, %s7552_s21 }
  0x11   : > { %p8675_p4 = scmp.eq.s32.totalorder %s7647_s25, 0  ;;  %p185_p7 = scmp.eq.s32.totalorder %s7647_s25, 1 }
  0x12   : > { %s7663_s30 = scalar_select %p31_p1, %s7560_s23, %s33_s28  }
  0x13   : > { %p7665_p5 = por %p41_p2, %p40_p0  ;;  %p7671_p6 = por %p8675_p4, %p46_p3 }
  0x14   : > { %8693 = sst [smem:[#allocation18_spill]] %s7663_s30  ;;  %p191_p8 = scmp.eq.s32.totalorder %s6405_s26, 1 }
  0x15   : > { %s8695_s8 = scalar_select %p7671_p6, 1, 0 }
  0x16   : > { %p6406_p9 = scmp.ge.s32.totalorder %s7564_s24, 1  ;;  %p198_p10 = scmp.lt.s32.totalorder %s7564_s24, 3 }
  0x17   : > { %p7678_p11 = por %p185_p7, %p40_p0  ;;  %p7682_p12 = por %p191_p8, %p46_p3 }
  0x18   : > { %p7686_p13 = pnand %p6406_p9, %p198_p10  ;;  %s7566_s12 = smov [#allocation9]  }
  0x19   : > { %s8696_s9 = scalar_select %p7678_p11, 1, 0 }
  0x1a   : > { %s8697_s10 = scalar_select %p7682_p12, 1, 0 }
  0x1b   : > { %s8698_s11 = scalar_select %p7686_p13, 1, 0 }
  0x1c   : > { %p7147_p1 = pneg %p7686_p13  ;;  %s210_s13 = sshll.u32 %s7566_s12, 4  ;;  %s211_s13 = int_to_ptr.vmem [resolvable:$true] %s210_s13 }
  0x1d   : > { %p7170_p3 = scmp.lt.s32.totalorder %s7564_s24, 2  ;;  %s8677_s15 = sand.u32 1, %s7560_s23  }
  0x1e   : > { %p7694_p2 = pnand %p7147_p1, %p8675_p4  ;;  %s7703_s16 = sshll.u32 %s8677_s15, 5 }
  0x1f   : > { %s7367_s17 = scalar_lea.vmem %s211_s13, 3072  ;;  %p7375_p1 = scmp.lt.s32.totalorder %s211_s13, %s211_s13 }
  0x20   : > { %s8699_s14 = scalar_select %p7694_p2, 1, 0 }
  0x21   : > { %p8684_p7 = pneg %p7694_p2  ;;  %p7368_p8 = scmp.ne.s32.totalorder %s211_s13, %s7367_s17 }
  0x22   : > { %p7376_p4 = scmp.lt.s32.totalorder %s7367_s17, %s7367_s17 }
  0x23   : > { %p7370_p9 = pnand %p7368_p8, %p8684_p7 }
  0x24   : > { %p7377_p12 = por %p7376_p4, %p7375_p1 }
  0x25   : > { %p7371_p10 = pneg %p7370_p9 }
  0x27   : > { %p7378_p11 = pnand %p7377_p12, %p7371_p10 }
  0x29   : > { %7381 = shalt.err (!%p7378_p11)
}
  0x2a   : > { %s8678_s18 = smov 128   ;;  %s8680_s19 = smov 8  }
  0x2b   : > { %s8700_s3 = sld [smem:[#allocation20_spill]]  ;;  %s7719_s28 = sshll.u32 %s7564_s24, 9 }
  0x2c   : > { %p7725_p4 = pnand %p7170_p3, %p7665_p5  ;;  %s261_s12 = sand.u32 1, %s7564_s24  }
  0x2d   : > { %s8702_s1 = sld [smem:[#allocation19_spill]]  ;;  %s7739_s7 = scalar_lea.sflag [#allocation7], %s261_s12 }
  0x2e   : > { %p7745_p11 = pneg %p7725_p4 }
  0x31   : > { %7150 = dma.hbm_to_vmem [thread:$0]  (!%p7694_p2), %s8700_s3, 3072, %s211_s13, [#allocation10], %s8678_s18, %s8678_s18, %s8680_s19  }
  0x32   : > { %s265_s13 = scalar_lea.vmem [#allocation6], %s7703_s16 }
  0x33   : > { %s7734_s30 = scalar_lea.hbm %s8702_s1, %s7719_s28  ;;  %s272_s20 = sshll.u32 %s265_s13, 4  ;;  %s7737_s20 = int_to_ptr.vmem [resolvable:$true] %s272_s20 }
  0x34   : > { %s7382_s26 = scalar_lea.hbm %s7734_s30, 512  ;;  %s7387_s19 = scalar_lea.hbm %s8702_s1, 1024 }
  0x35   : > { %p7383_p5 = scmp.ne.s32.totalorder %s7734_s30, %s7382_s26  ;;  %p7388_p8 = scmp.lt.s32.totalorder %s7734_s30, %s8702_s1 }
  0x36   : > { %p7389_p9 = scmp.lt.s32.totalorder %s7387_s19, %s7382_s26 }
  0x37   : > { %p7385_p12 = pnand %p7745_p11, %p7383_p5 }
  0x38   : > { %p7390_p10 = por %p7389_p9, %p7388_p8 }
  0x39   : > { %p7386_p3 = pneg %p7385_p12 }
  0x3b   : > { %p7391_p1 = pnand %p7390_p10, %p7386_p3 }
  0x3d   : > { %7394 = shalt.err (!%p7391_p1)
}
  0x3e   : > { %s7395_s12 = scalar_lea.vmem %s7737_s20, 512  ;;  %s7569_s27 = smov [#allocation6]  }
  0x3f   : > { %p7396_p0 = scmp.ne.s32.totalorder %s7737_s20, %s7395_s12  ;;  %s7400_s15 = sshll.u32 %s7569_s27, 4  ;;  %s7401_s15 = int_to_ptr.vmem [resolvable:$false] %s7400_s15 }
  0x40   : > { %s7402_s17 = scalar_lea.vmem %s7401_s15, 1024  ;;  %p7403_p7 = scmp.lt.s32.totalorder %s7737_s20, %s7401_s15 }
  0x41   : > { %p7398_p5 = pnand %p7396_p0, %p7745_p11  ;;  %p7404_p6 = scmp.lt.s32.totalorder %s7402_s17, %s7395_s12 }
  0x43   : > { %p7399_p12 = pneg %p7398_p5  ;;  %p7405_p13 = por %p7404_p6, %p7403_p7 }
  0x45   : > { %p7406_p2 = pnand %p7405_p13, %p7399_p12 }
  0x47   : > { %7409 = shalt.err (!%p7406_p2)
}
  0x48   : > { %s8704_s3 = smov 8   ;;  %s8705_s19 = smov 128  }
  0x49   : > { %7160 = dma.hbm_to_vmem [thread:$0]  (!%p7725_p4), %s7734_s30, 512, %s7737_s20, %s7739_s7, %s8705_s19, %s8705_s19, %s8704_s3  }
  0x4a   : > { %s7570_s26 = smov [#allocation11]   ;;  %p8706_p3 = scmp.ne.s32.totalorder %s8699_s14, 0 }
  0x4b   : > { %s223_s13 = sshll.u32 %s7570_s26, 4  ;;  %s224_s13 = int_to_ptr.vmem [resolvable:$true] %s223_s13 }
  0x4c   : > { %s7421_s27 = scalar_lea.vmem %s224_s13, 1024  ;;  %p8707_p8 = pneg %p8706_p3 }
  0x4d   : > { %p7422_p0 = scmp.ne.s32.totalorder %s224_s13, %s7421_s27  ;;  %p7429_p2 = scmp.lt.s32.totalorder %s224_s13, %s224_s13 }
  0x4e   : > { %p7430_p7 = scmp.lt.s32.totalorder %s7421_s27, %s7421_s27 }
  0x4f   : > { %p7424_p6 = pnand %p7422_p0, %p8707_p8 }
  0x50   : > { %p7431_p9 = por %p7430_p7, %p7429_p2 }
  0x51   : > { %p7425_p13 = pneg %p7424_p6 }
  0x53   : > { %p7432_p10 = pnand %p7431_p9, %p7425_p13 }
  0x55   : > { %7435 = shalt.err (!%p7432_p10)
}
  0x56   : > { %s8708_s4 = sld [smem:[#allocation21_spill]]  ;;  %s7786_s17 = scalar_lea.hbm %s8668_s0, %s7719_s28 }
  0x57   : > { %s244_s14 = scalar_lea.vmem [#allocation3], %s7703_s16  ;;  %s8709_s27 = sand.u32 1, %s7560_s23  }
  0x58   : > { %s251_s26 = sshll.u32 %s244_s14, 4  ;;  %s241_s1 = scalar_lea.sflag [#allocation4], %s8709_s27  ;;  %s7789_s26 = int_to_ptr.vmem [resolvable:$true] %s251_s26 }
  0x59   : > { %s7436_s30 = scalar_lea.hbm %s7786_s17, 512  ;;  %s7441_s12 = scalar_lea.hbm %s8668_s0, 1024 }
  0x5a   : > { %p7437_p1 = scmp.ne.s32.totalorder %s7786_s17, %s7436_s30  ;;  %p7442_p0 = scmp.lt.s32.totalorder %s7786_s17, %s8668_s0 }
  0x5c   : > { %7153 = dma.hbm_to_vmem [thread:$0]  (!%p8706_p3), %s8708_s4, 1024, %s224_s13, [#allocation10], %s8705_s19, %s8705_s19, %s8704_s3  }
  0x5d   : > { %p7439_p5 = pnand %p7437_p1, %p7745_p11  ;;  %p7443_p3 = scmp.lt.s32.totalorder %s7441_s12, %s7436_s30 }
  0x5f   : > { %p7440_p12 = pneg %p7439_p5  ;;  %p7444_p8 = por %p7443_p3, %p7442_p0 }
  0x61   : > { %p7445_p6 = pnand %p7444_p8, %p7440_p12 }
  0x63   : > { %7448 = shalt.err (!%p7445_p6)
}
  0x64   : > { %s7449_s14 = scalar_lea.vmem %s7789_s26, 512  ;;  %s7571_s27 = smov [#allocation3]  }
  0x65   : > { %p7450_p13 = scmp.ne.s32.totalorder %s7789_s26, %s7449_s14  ;;  %s7454_s13 = sshll.u32 %s7571_s27, 4  ;;  %s7455_s13 = int_to_ptr.vmem [resolvable:$false] %s7454_s13 }
  0x66   : > { %s7456_s20 = scalar_lea.vmem %s7455_s13, 1024  ;;  %p7457_p9 = scmp.lt.s32.totalorder %s7789_s26, %s7455_s13 }
  0x67   : > { %p7452_p2 = pnand %p7450_p13, %p7745_p11  ;;  %p7458_p10 = scmp.lt.s32.totalorder %s7456_s20, %s7449_s14 }
  0x69   : > { %p7453_p7 = pneg %p7452_p2  ;;  %p7459_p1 = por %p7458_p10, %p7457_p9 }
  0x6b   : > { %p7460_p5 = pnand %p7459_p1, %p7453_p7 }
  0x6d   : > { %7463 = shalt.err (!%p7460_p5)
}
  0x6e   : > { %7157 = dma.hbm_to_vmem [thread:$0]  (!%p7725_p4), %s7786_s17, 512, %s7789_s26, %s241_s1, %s8705_s19, %s8705_s19, %s8704_s3  }
  0x6f   : > { %s7820_s12 = scalar_lea.hbm %s8670_s2, %s7719_s28  ;;  %s286_s15 = scalar_lea.vmem [#allocation8], %s7703_s16 }
  0x70   : > { %s293_s14 = sshll.u32 %s286_s15, 4  ;;  %s7464_s27 = scalar_lea.hbm %s7820_s12, 512  ;;  %s294_s14 = int_to_ptr.vmem [resolvable:$true] %s293_s14 }
  0x71   : > { %p7465_p12 = scmp.ne.s32.totalorder %s7820_s12, %s7464_s27  ;;  %s7469_s1 = scalar_lea.hbm %s8670_s2, 1024 }
  0x72   : > { %p7470_p8 = scmp.lt.s32.totalorder %s7820_s12, %s8670_s2  ;;  %p7471_p6 = scmp.lt.s32.totalorder %s7469_s1, %s7464_s27 }
  0x73   : > { %p7467_p0 = pnand %p7465_p12, %p7745_p11 }
  0x74   : > { %p7472_p13 = por %p7471_p6, %p7470_p8 }
  0x75   : > { %p7468_p3 = pneg %p7467_p0 }
  0x77   : > { %p7473_p2 = pnand %p7472_p13, %p7468_p3 }
  0x79   : > { %7476 = shalt.err (!%p7473_p2)
}
  0x7a   : > { %s7477_s16 = scalar_lea.vmem %s294_s14, 512  ;;  %s7572_s28 = smov [#allocation8]  }
  0x7b   : > { %p7478_p7 = scmp.ne.s32.totalorder %s294_s14, %s7477_s16  ;;  %s7482_s4 = sshll.u32 %s7572_s28, 4  ;;  %s7483_s4 = int_to_ptr.vmem [resolvable:$false] %s7482_s4 }
  0x7c   : > { %s7484_s30 = scalar_lea.vmem %s7483_s4, 1024  ;;  %p7485_p1 = scmp.lt.s32.totalorder %s294_s14, %s7483_s4 }
  0x7d   : > { %p7480_p9 = pnand %p7478_p7, %p7745_p11  ;;  %p7486_p5 = scmp.lt.s32.totalorder %s7484_s30, %s7477_s16 }
  0x7f   : > { %p7481_p10 = pneg %p7480_p9  ;;  %p7487_p12 = por %p7486_p5, %p7485_p1 }
  0x81   : > { %p7488_p0 = pnand %p7487_p12, %p7481_p10 }
  0x83   : > { %7491 = shalt.err (!%p7488_p0)
}
  0x84   : > { %7163 = dma.hbm_to_vmem [thread:$0]  (!%p7725_p4), %s7820_s12, 512, %s294_s14, %s7739_s7, %s8705_s19, %s8705_s19, %s8704_s3  }
  0x85   : > { %p8710_p11 = scmp.ne.s32.totalorder %s8698_s11, 0 }
  0x86   : > { %s7846_s18 = sand.u32 (!%p8710_p11), 1, %s7556_s22   ;;  %p8711_p3 = scmp.ne.s32.totalorder (!%p8710_p11), %s8695_s8, 0 }
  0x87   : > { %305 = sbr.rel (%p8710_p11) target bundleno = 5444 (0x1544), region = 44  ;;  %s7849_s15 = sshll.u32 (!%p8710_p11), %s7846_s18, 5 }
  0x88   : > { %s308_s27 = scalar_lea.sflag (!%p8710_p11), [#allocation4], %s7846_s18  ;;  %s7853_s29 = scalar_lea.vmem (!%p8710_p11), [#allocation3], %s7849_s15 }
  0x8c   : > { %7535 = dma.done.wait (%p8711_p3), %s308_s27, 512  }
  0x8d   : > { %7537 = vsyncadd (%p8711_p3), %s308_s27, 4294966784  ;;  %s316_s11 = sand.u32 1, %s7647_s25   ;;  %s7861_s3 = scalar_lea.vmem [#allocation6], %s7849_s15 }
  0x8e   : > { %s317_s7 = scalar_lea.sflag [#allocation7], %s316_s11 }
  0x8f   : > { %7539 = dma.done.wait (%p8711_p3), %s317_s7, 1024  }
  0x90   : > { %7541 = vsyncadd (%p8711_p3), %s317_s7, 4294966272  ;;  %s7868_s19 = scalar_lea.vmem [#allocation8], %s7849_s15  ;;  %p8712_p4 = scmp.eq.s32.totalorder %s7647_s25, 0 }
  0x92   : > { %7543 = dma.done.wait (%p8712_p4), [#allocation10], 4096   ;;  %p8713_p8 = pmov %p8712_p4 }
  0x93   : > { %v392_v0 = vld [vmem:[#allocation9 + $0x38] sm:$0xff]  ;;  %v391_v1 = vld [vmem:[#allocation9 + $0x30] sm:$0xff]  ;;  %vm397_vm0 = vcmask 523264   ;;  %v390_v2 = vld [vmem:[#allocation9 + $0x28] sm:$0xff]  ;;  %v7573_v36 = vmov 0.0   ;;  %vm7574_vm1 = vmmov 0   ;;  %v393_v37 = vlaneseq }
  0x94   : > { %7545 = vsyncadd (%p8713_p8), [#allocation10], 4294963200  ;;  %6723 = vmatprep.subr.mxu1 %v392_v0  ;;  %v381_v3 = vld [vmem:[%s7853_s29] sm:$0xff]  ;;  %v388_v5 = vld [vmem:[#allocation9 + $0x18] sm:$0xff]  ;;  %vm723_vm2 = vcmask 64512   ;;  %s7575_s14 = smov 120  }
  0x95   : > { %6724 = vmatpush3.msra.mxu1 %v392_v0  ;;  %6739 = vmatprep.mubr.msk.f32.mxu1 %vm397_vm0, %v381_v3  ;;  %v389_v4 = vld [vmem:[#allocation9 + $0x20] sm:$0xff]  ;;  %v387_v6 = vld [vmem:[#allocation9 + $0x10] sm:$0xff]  ;;  %v386_v7 = vld [vmem:[#allocation9 + $0x8] sm:$0xff]  ;;  %v7904_v39 = vshrl.u32 %v393_v37, 7  ;;  %s7576_s13 = smov 112   ;;  %s7577_s20 = smov 104  }
  0x96   : > { %6725 = vmatprep.subr.mxu1 %v391_v1  ;;  %v385_v8 = vld [vmem:[#allocation9] sm:$0xff]  ;;  %v382_v9 = vld [vmem:[%s7853_s29 + $0x8] sm:$0xff]  ;;  %v507_v10 = vld [vmem:[#allocation9 + $0x78] sm:$0xff]  ;;  %s7578_s1 = smov 96   ;;  %s7579_s17 = smov 88   ;;  %vm2048_vm3 = vcmask 130112  }
  0x97   : > { %6726 = vmatpush3.msra.mxu1 %v391_v1  ;;  %v383_v11 = vld [vmem:[%s7853_s29 + $0x10] sm:$0xff]  ;;  %v505_v13 = vld [vmem:[#allocation9 + $0x68] sm:$0xff]  ;;  %v384_v14 = vld [vmem:[%s7853_s29 + $0x18] sm:$0xff]  ;;  %v510_v41 = vsub.s32 1, %v7904_v39  ;;  %v395_v44 = vsub.s32 0, %v7904_v39  ;;  %v624_v60 = vsub.s32 2, %v7904_v39 }
  0x98   : > { %6727 = vmatprep.subr.mxu1 %v390_v2  ;;  %v506_v12 = vld [vmem:[#allocation9 + $0x70] sm:$0xff]  ;;  %v495_v15 = vld [vmem:[%s7861_s3] sm:$0xff]  ;;  %v503_v17 = vld [vmem:[#allocation9 + $0x58] sm:$0xff]  ;;  %s7580_s26 = smov 80   ;;  %s7581_s16 = smov 72   ;;  %vm2729_vm4 = vcmask 195712  }
  0x99   : > { %6728 = vmatpush3.msra.mxu1 %v390_v2  ;;  %v504_v16 = vld [vmem:[#allocation9 + $0x60] sm:$0xff]  ;;  %v502_v18 = vld [vmem:[#allocation9 + $0x50] sm:$0xff]  ;;  %v501_v19 = vld [vmem:[#allocation9 + $0x48] sm:$0xff]  ;;  %s7582_s28 = smov 8   ;;  %s7583_s4 = smov 16   ;;  %vm3410_vm5 = vcmask 261312  }
  0x9a   : > { %6729 = vmatprep.subr.mxu1 %v389_v4  ;;  %v500_v20 = vld [vmem:[#allocation9 + $0x40] sm:$0xff]  ;;  %v496_v21 = vld [vmem:[%s7861_s3 + $0x8] sm:$0xff]  ;;  %v497_v22 = vld [vmem:[%s7861_s3 + $0x10] sm:$0xff]  ;;  %s7584_s30 = smov 24   ;;  %s7585_s27 = smov 32   ;;  %vm4091_vm6 = vcmask 326912  }
  0x9b   : > { %6730 = vmatpush3.msra.mxu1 %v389_v4  ;;  %v498_v23 = vld [vmem:[%s7861_s3 + $0x18] sm:$0xff]  ;;  %v620_v25 = vld [vmem:[#allocation9 + $0xb0] sm:$0xff]  ;;  %v619_v26 = vld [vmem:[#allocation9 + $0xa8] sm:$0xff]  ;;  %s7586_s29 = smov 40   ;;  %s7587_s11 = smov 48   ;;  %vm4772_vm7 = vcmask 392512  }
  0x9c   : > { %6731 = vmatprep.subr.mxu1 %v388_v5  ;;  %v621_v24 = vld [vmem:[#allocation9 + $0xb8] sm:$0xff]  ;;  %v618_v27 = vld [vmem:[#allocation9 + $0xa0] sm:$0xff]  ;;  %v616_v29 = vld [vmem:[#allocation9 + $0x90] sm:$0xff]  ;;  %s7588_s7 = smov 56   ;;  %vm5453_vm8 = vcmask 458112   ;;  %vm6134_vm9 = vcmask 523712  }
  0x9d   : > { %6732 = vmatpush3.msra.mxu1 %v388_v5  ;;  %6767 = vmatprep.subr.mxu0 %v621_v24  ;;  %v617_v28 = vld [vmem:[#allocation9 + $0x98] sm:$0xff]  ;;  %v615_v30 = vld [vmem:[#allocation9 + $0x88] sm:$0xff]  ;;  %v609_v31 = vld [vmem:[%s7868_s19] sm:$0xff]  ;;  %s375_s8 = scalar_lea.vmem [#allocation12], %s7849_s15  ;;  %p8714_p13 = scmp.ne.s32.totalorder %s8696_s9, 0 }
  0x9e   : > { %6733 = vmatprep.subr.mxu1 %v387_v6  ;;  %6768 = vmatpush3.msra.mxu0 %v621_v24  ;;  %v614_v32 = vld [vmem:[#allocation9 + $0x80] sm:$0xff]  ;;  %v610_v33 = vld [vmem:[%s7868_s19 + $0x8] sm:$0xff]  ;;  %v611_v34 = vld [vmem:[%s7868_s19 + $0x10] sm:$0xff]  ;;  %s6270_s12 = sshll.u32 %s375_s8, 4  ;;  %s8617_s12 = int_to_ptr.vmem [resolvable:$true] %s6270_s12 }
  0x9f   : > { %6734 = vmatpush3.msra.mxu1 %v387_v6  ;;  %6769 = vmatprep.subr.mxu0 %v620_v25  ;;  %v612_v35 = vld [vmem:[%s7868_s19 + $0x18] sm:$0xff]  ;;  %v380_v43 = vld [vmem:[%s8673_s5] sm:$0xf] }
  0xa0   : > { %6735 = vmatprep.subr.mxu1 %v386_v7  ;;  %6770 = vmatpush3.msra.mxu0 %v620_v25  ;;  %v511_v45 = vrot.slane %v380_v43, %v510_v41  ;;  %v396_v47 = vrot.slane %v380_v43, %v395_v44  ;;  %v7956_v61 = vrot.slane %v380_v43, %v624_v60 }
  0xa1   : > { %6736 = vmatpush3.msra.mxu1 %v386_v7  ;;  %6771 = vmatprep.subr.mxu0 %v619_v26 }
  0xa2   : > { %6737 = vmatprep.subr.mxu1 %v385_v8  ;;  %6772 = vmatpush3.msra.mxu0 %v619_v26 }
  0xa3   : > { %6738 = vmatpush3.msra.mxu1 %v385_v8  ;;  %6773 = vmatprep.subr.mxu0 %v618_v27 }
  0xa4   : > { %6740 = vmatmul.mubr.msk.f32.vlgmr.msra.gmra.mxu1 %vm397_vm0, %v382_v9  ;;  %6745 = vmatprep.subr.mxu1 %v507_v10 }
  0xa5   : > { %6746 = vmatpush3.msra.mxu1 %v507_v10  ;;  %6742 = vmatprep.mubr.msk.f32.mxu1 %vm397_vm0, %v383_v11 }
  0xa6   : > { %6747 = vmatprep.subr.mxu1 %v506_v12  ;;  %6774 = vmatpush3.msra.mxu0 %v618_v27 }
  0xa7   : > { %6748 = vmatpush3.msra.mxu1 %v506_v12  ;;  %6775 = vmatprep.subr.mxu0 %v617_v28 }
  0xa8   : > { %6749 = vmatprep.subr.mxu1 %v505_v13  ;;  %6743 = vmatmul.mubr.msk.f32.gmra.mxu1 %vm397_vm0, %v384_v14 }
  0xa9   : > { %6750 = vmatpush3.msra.mxu1 %v505_v13  ;;  %6761 = vmatprep.mubr.msk.f32.mxu1 %vm397_vm0, %v495_v15 }
  0xaa   : > { %6751 = vmatprep.subr.mxu1 %v504_v16  ;;  %6776 = vmatpush3.msra.mxu0 %v617_v28 }
  0xab   : > { %6752 = vmatpush3.msra.mxu1 %v504_v16  ;;  %6777 = vmatprep.subr.mxu0 %v616_v29 }
  0xac   : > { %6753 = vmatprep.subr.mxu1 %v503_v17  ;;  %6783 = vmatprep.mubr.msk.f32.mxu0 %vm397_vm0, %v609_v31 }
  0xad   : > { %6754 = vmatpush3.msra.mxu1 %v503_v17  ;;  %6778 = vmatpush3.msra.mxu0 %v616_v29 }
  0xae   : > { %6755 = vmatprep.subr.mxu1 %v502_v18  ;;  %6779 = vmatprep.subr.mxu0 %v615_v30 }
  0xaf   : > { %6756 = vmatpush3.msra.mxu1 %v502_v18  ;;  %6780 = vmatpush3.msra.mxu0 %v615_v30 }
  0xb0   : > { %6757 = vmatprep.subr.mxu1 %v501_v19  ;;  %6781 = vmatprep.subr.mxu0 %v614_v32 }
  0xb1   : > { %6758 = vmatpush3.msra.mxu1 %v501_v19  ;;  %6782 = vmatpush3.msra.mxu0 %v614_v32 }
  0xb2   : > { %6759 = vmatprep.subr.mxu1 %v500_v20  ;;  %6784 = vmatmul.mubr.msk.f32.vlgmr.msra.gmra.mxu0 %vm397_vm0, %v610_v33 }
  0xb3   : > { %6760 = vmatpush3.msra.mxu1 %v500_v20  ;;  %6786 = vmatprep.mubr.msk.f32.mxu0 %vm397_vm0, %v611_v34 }
  0xb4   : > { %6762 = vmatmul.mubr.msk.f32.vlgmr.msra.gmra.mxu1 %vm397_vm0, %v496_v21  ;;  %6794 = vmatprep.subr.mxu1 %v7573_v36 }
  0xb5   : > { %6764 = vmatprep.mubr.msk.f32.mxu1 %vm397_vm0, %v497_v22  ;;  %6789 = vmatprep.subr.mxu0 %v7573_v36 }
  0xb6   : > { %6787 = vmatmul.mubr.msk.f32.gmra.mxu0 %vm397_vm0, %v612_v35 }
  0xb7   : > { %6791 = vmatprep.mubr.msk.f32.mxu0 %vm7574_vm1, %v7573_v36 }
  0xb8   : > { %6765 = vmatmul.mubr.msk.f32.gmra.mxu1 %vm397_vm0, %v498_v23 }
  0xb9   : > { %6796 = vmatprep.mubr.msk.f32.mxu1 %vm7574_vm1, %v7573_v36 }
 0x164   : > { %v6741_v38 = vpop.f32.mrf.mxu1 }
 0x165   : > { %v7917_v52 = vadd.f32 %v6741_v38, %v396_v47 }
 0x166   : > { %v476_v40 = vpop.f32.mrf.mxu1 }
 0x167   : > { %v7922_v54 = vadd.f32 %v476_v40, %v396_v47 }
 0x168   : > { %v6744_v42 = vpop.f32.mrf.mxu1 }
 0x169   : > { %v7948_v59 = vadd.f32 %v6744_v42, %v396_v47 }
 0x16a   : > { %v486_v46 = vpop.f32.mrf.mxu1 }
 0x16b   : > { %v7939_v58 = vadd.f32 %v486_v46, %v396_v47 }
 0x172   : > { %v6785_v62 = vpop.f32.mrf.mxu0 }
 0x173   : > { %v7959_v63 = vadd.f32 %v6785_v62, %v7956_v61 }
 0x174   : > { %v6763_v48 = vpop.f32.mrf.mxu1  ;;  %v704_v0 = vpop.f32.mrf.mxu0 }
 0x175   : > { %v7911_v49 = vadd.f32 %v6763_v48, %v511_v45  ;;  %v7962_v1 = vadd.f32 %v704_v0, %v7956_v61 }
 0x176   : > { %v590_v50 = vpop.f32.mrf.mxu1  ;;  %v6788_v2 = vpop.f32.mrf.mxu0 }
 0x177   : > { %v7913_v51 = vadd.f32 %v590_v50, %v511_v45  ;;  %6795 = vmatpush3.xpose.msk.msra.mxu1 %vm723_vm2, %v7911_v49  ;;  %v7967_v3 = vadd.f32 %v6788_v2, %v7956_v61 }
 0x178   : > { %v6766_v53 = vpop.f32.mrf.mxu1  ;;  %6799 = vmatprep.subr.mxu1 %v7573_v36  ;;  %v714_v4 = vpop.f32.mrf.mxu0 }
 0x179   : > { %6790 = vmatpush3.xpose.msk.msra.mxu0 %vm723_vm2, %v7913_v51  ;;  %v7933_v57 = vadd.f32 %v6766_v53, %v511_v45  ;;  %v7996_v44 = vadd.f32 %v714_v4, %v7956_v61 }
 0x17a   : > { %v600_v55 = vpop.f32.mrf.mxu1  ;;  %6797 = vmatmul.mubr.msk.f32.vlgmr.msra.gmra.mxu1 %vm723_vm2, %v7917_v52  ;;  %6809 = vmatprep.subr.mxu0 %v7573_v36 }
 0x17b   : > { %v7927_v56 = vadd.f32 %v600_v55, %v511_v45  ;;  %6801 = vmatprep.mubr.msk.f32.mxu1 %vm7574_vm1, %v7573_v36 }
 0x17c   : > { %6792 = vmatmul.mubr.msk.f32.vlgmr.msra.gmra.mxu0 %vm723_vm2, %v7922_v54 }
 0x17d   : > { %6800 = vmatpush3.xpose.msk.msra.mxu1 %vm723_vm2, %v7927_v56  ;;  %6811 = vmatprep.mubr.msk.f32.mxu0 %vm7574_vm1, %v7573_v36 }
 0x17e   : > { %6804 = vmatprep.subr.mxu1 %v7573_v36  ;;  %6810 = vmatpush3.msra.mxu0 %v7962_v1 }
 0x17f   : > { %6819 = vmatprep.subr.mxu0 %v7573_v36 }
 0x180   : > { %6802 = vmatmul.mubr.msk.f32.vlgmr.msra.gmra.mxu1 %vm723_vm2, %v7939_v58 }
 0x181   : > { %6805 = vmatpush3.xpose.msk.msra.mxu1 %vm723_vm2, %v7933_v57  ;;  %6806 = vmatprep.mubr.msk.f32.mxu1 %vm7574_vm1, %v7573_v36 }
 0x182   : > { %6814 = vmatprep.subr.mxu1 %v7573_v36 }
 0x184   : > { %6807 = vmatmul.mubr.msk.f32.vlgmr.msra.gmra.mxu1 %vm723_vm2, %v7948_v59 }
 0x185   : > { %6816 = vmatprep.mubr.msk.f32.mxu1 %vm7574_vm1, %v7573_v36  ;;  %6815 = vmatpush3.msra.mxu1 %v7959_v63 }
 0x186   : > { %6824 = vmatprep.subr.mxu1 %v7573_v36 }
 0x23a   : > { %v872_v5 = vpop.f32.mrf.mxu1 }
 0x23b   : > { %v1031_v12 = vsel %vm723_vm2, %v872_v5, -inf }
 0x23c   : > { %v796_v6 = vpop.f32.mrf.mxu0  ;;  %v6798_v7 = vpop.f32.mrf.mxu1 }
 0x23d   : > { %v1028_v8 = vsel %vm723_vm2, %v796_v6, -inf }
 0x23e   : > { %1029 = vmax.xlane.f32.xlu0 %v1028_v8  ;;  %v6793_v9 = vpop.f32.mrf.mxu0 }
 0x240   : > { %v948_v10 = vpop.f32.mrf.mxu1 }
 0x241   : > { %v1034_v11 = vsel %vm723_vm2, %v948_v10, -inf }
 0x242   : > { %1035 = vmax.xlane.f32.xlu1 %v1034_v11  ;;  %v6803_v13 = vpop.f32.mrf.mxu1  ;;  %1032 = vmax.xlane.f32.xlu0 %v1031_v12 }
 0x244   : > { %v1024_v14 = vpop.f32.mrf.mxu1 }
 0x245   : > { %v1037_v15 = vsel %vm723_vm2, %v1024_v14, -inf }
 0x246   : > { %1038 = vmax.xlane.f32.xlu1 %v1037_v15  ;;  %v6808_v16 = vpop.f32.mrf.mxu1 }
 0x2c7   : > { %v1030_v17 = vpop.xlane.xlu0 %1029 }
 0x2c8   : > { %v1040_v18 = vsub.f32 %v796_v6, %v1030_v17 }
 0x2ca   : > { %v1044_v19 = vmul.f32 1.442695, %v1040_v18 }
 0x2cb   : > { %v1036_v20 = vpop.xlane.xlu1 %1035  ;;  %v1033_v21 = vpop.xlane.xlu0 %1032 }
 0x2cc   : > { %7227 = vpow2.f32 %v1044_v19  ;;  %v1042_v22 = vsub.f32 %v948_v10, %v1036_v20  ;;  %v1041_v23 = vsub.f32 %v872_v5, %v1033_v21 }
 0x2ce   : > { %v1048_v24 = vmul.f32 1.442695, %v1042_v22  ;;  %v1046_v25 = vmul.f32 1.442695, %v1041_v23 }
 0x2cf   : > { %v1039_v32 = vpop.xlane.xlu1 %1038 }
 0x2d0   : > { %7229 = vpow2.f32 %v1048_v24  ;;  %v1043_v33 = vsub.f32 %v1024_v14, %v1039_v32 }
 0x2d1   : > { %7231 = vpow2.f32 %v1046_v25 }
 0x2d2   : > { %v1050_v34 = vmul.f32 1.442695, %v1043_v33 }
 0x2d4   : > { %7233 = vpow2.f32 %v1050_v34 }
 0x2d9   : > { %v7228_v26 = vpop.eup %7227 }
 0x2da   : > { %v1052_v27 = vsel %vm723_vm2, %v7228_v26, 0.0 }
 0x2db   : > { %1053 = vadd.xlane.f32.xlu0 %v1052_v27 }
 0x2dd   : > { %v7230_v28 = vpop.eup %7229 }
 0x2de   : > { %v7232_v29 = vpop.eup %7231  ;;  %v1058_v30 = vsel %vm723_vm2, %v7230_v28, 0.0 }
 0x2df   : > { %1059 = vadd.xlane.f32.xlu0 %v1058_v30  ;;  %v1055_v31 = vsel %vm723_vm2, %v7232_v29, 0.0 }
 0x2e0   : > { %1056 = vadd.xlane.f32.xlu1 %v1055_v31 }
 0x2e1   : > { %v7234_v35 = vpop.eup %7233 }
 0x2e2   : > { %v1061_v37 = vsel %vm723_vm2, %v7234_v35, 0.0 }
 0x2f1   : > { %1448 = vrot.lane.b32.xlu1 %v7911_v49, %s7575_s14 }
 0x2f5   : > { %1368 = vrot.lane.b32.xlu1 %v7922_v54, %s7575_s14  ;;  %1370 = vrot.lane.b32.xlu0 %v7913_v51, %s7575_s14 }
 0x2f9   : > { %1446 = vrot.lane.b32.xlu1 %v7917_v52, %s7575_s14  ;;  %1526 = vrot.lane.b32.xlu0 %v7927_v56, %s7575_s14 }
 0x2fd   : > { %1604 = vrot.lane.b32.xlu1 %v7933_v57, %s7575_s14  ;;  %1524 = vrot.lane.b32.xlu0 %v7939_v58, %s7575_s14 }
 0x321   : > { %1062 = vadd.xlane.f32.xlu1 %v1061_v37 }
 0x332   : > { %1602 = vrot.lane.b32.xlu1 %v7948_v59, %s7575_s14 }
 0x364   : > { %v1054_v38 = vpop.xlane.xlu0 %1053 }
 0x365   : > { %7235 = vrcp.f32 %v1054_v38 }
 0x368   : > { %v1060_v40 = vpop.xlane.xlu0 %1059 }
 0x369   : > { %v1057_v41 = vpop.xlane.xlu1 %1056  ;;  %7237 = vrcp.f32 %v1060_v40 }
 0x36a   : > { %7239 = vrcp.f32 %v1057_v41 }
 0x36c   : > { %v1371_v45 = vpop.permute.xlu0 %1370 }
 0x36d   : > { %v1449_v47 = vpop.permute.xlu1 %1448 }
 0x370   : > { %v1527_v55 = vpop.permute.xlu0 %1526 }
 0x371   : > { %v1369_v60 = vpop.permute.xlu1 %1368 }
 0x372   : > { %v7236_v42 = vpop.eup %7235 }
 0x373   : > { %v1068_v43 = vmul.f32 %v7236_v42, %v7228_v26 }
 0x374   : > { %v1525_v61 = vpop.permute.xlu0 %1524 }
 0x375   : > { %6812 = vmatmul.mubr.msk.f32.vlgmr.msra.gmra.mxu0 %vm723_vm2, %v1068_v43  ;;  %v1447_v62 = vpop.permute.xlu1 %1446 }
 0x376   : > { %v7238_v46 = vpop.eup %7237  ;;  %6820 = vmatpush3.msra.mxu0 %v7996_v44  ;;  %6821 = vmatprep.mubr.msk.f32.mxu0 %vm7574_vm1, %v7573_v36 }
 0x377   : > { %v7240_v48 = vpop.eup %7239  ;;  %6829 = vmatprep.subr.mxu0 %v7573_v36  ;;  %v1070_v50 = vmul.f32 %v7238_v46, %v7230_v28 }
 0x378   : > { %v1069_v53 = vmul.f32 %v7240_v48, %v7232_v29 }
 0x379   : > { %6822 = vmatmul.mubr.msk.f32.vlgmr.msra.gmra.mxu0 %vm723_vm2, %v1070_v50  ;;  %v1605_v0 = vpop.permute.xlu1 %1604 }
 0x37a   : > { %6817 = vmatmul.mubr.msk.f32.vlgmr.msra.gmra.mxu1 %vm723_vm2, %v1069_v53  ;;  %6830 = vmatpush3.xpose.msk.msra.mxu0 %vm723_vm2, %v1371_v45 }
 0x37b   : > { %6825 = vmatpush3.msra.mxu1 %v7967_v3  ;;  %6831 = vmatprep.mubr.msk.f32.mxu0 %vm7574_vm1, %v7573_v36 }
 0x37c   : > { %6839 = vmatprep.subr.mxu0 %v7573_v36  ;;  %6826 = vmatprep.mubr.msk.f32.mxu1 %vm7574_vm1, %v7573_v36 }
 0x37d   : > { %6832 = vmatmul.mubr.msk.f32.vlgmr.msra.gmra.mxu0 %vm723_vm2, %v1369_v60  ;;  %6834 = vmatprep.subr.mxu1 %v7573_v36 }
 0x37e   : > { %6840 = vmatpush3.xpose.msk.msra.mxu0 %vm723_vm2, %v1527_v55  ;;  %6841 = vmatprep.mubr.msk.f32.mxu0 %vm7574_vm1, %v7573_v36 }
 0x37f   : > { %6849 = vmatprep.subr.mxu0 %v7573_v36 }
 0x381   : > { %6842 = vmatmul.mubr.msk.f32.vlgmr.msra.gmra.mxu0 %vm723_vm2, %v1525_v61 }
 0x382   : > { %6851 = vmatprep.mubr.msk.f32.mxu0 %vm7574_vm1, %v7573_v36 }
 0x3aa   : > { %v1063_v2 = vpop.xlane.xlu1 %1062 }
 0x3ab   : > { %7241 = vrcp.f32 %v1063_v2 }
 0x3ae   : > { %v1603_v6 = vpop.permute.xlu1 %1602 }
 0x3b8   : > { %v7242_v4 = vpop.eup %7241 }
 0x3b9   : > { %v1071_v5 = vmul.f32 %v7242_v4, %v7234_v35 }
 0x3bb   : > { %6827 = vmatmul.mubr.msk.f32.vlgmr.msra.gmra.mxu1 %vm723_vm2, %v1071_v5 }
 0x3bc   : > { %6835 = vmatpush3.xpose.msk.msra.mxu1 %vm723_vm2, %v1449_v47  ;;  %6836 = vmatprep.mubr.msk.f32.mxu1 %vm7574_vm1, %v7573_v36 }
 0x3bd   : > { %6844 = vmatprep.subr.mxu1 %v7573_v36 }
 0x3bf   : > { %6837 = vmatmul.mubr.msk.f32.vlgmr.msra.gmra.mxu1 %vm723_vm2, %v1447_v62 }
 0x3c0   : > { %6845 = vmatpush3.xpose.msk.msra.mxu1 %vm723_vm2, %v1605_v0  ;;  %6846 = vmatprep.mubr.msk.f32.mxu1 %vm7574_vm1, %v7573_v36 }
 0x3c1   : > { %6854 = vmatprep.subr.mxu1 %v7573_v36 }
 0x3c3   : > { %6847 = vmatmul.mubr.msk.f32.vlgmr.msra.gmra.mxu1 %vm723_vm2, %v1603_v6 }
 0x3c4   : > { %6856 = vmatprep.mubr.msk.f32.mxu1 %vm7574_vm1, %v7573_v36 }
 0x435   : > { %v1141_v7 = vpop.f32.mrf.mxu0 }
 0x436   : > { %1364 = vst.msk [vmem:[#allocation2] sm:$0xff] %vm723_vm2, %v1141_v7 }
 0x437   : > { %v6813_v8 = vpop.f32.mrf.mxu0 }
 0x439   : > { %v1287_v9 = vpop.f32.mrf.mxu0 }
 0x43a   : > { %v1214_v10 = vpop.f32.mrf.mxu1  ;;  %1366 = vst.msk [vmem:[#allocation2 + $0x10] sm:$0xff] %vm723_vm2, %v1287_v9 }
 0x43b   : > { %1365 = vst.msk [vmem:[#allocation2 + $0x8] sm:$0xff] %vm723_vm2, %v1214_v10  ;;  %v6823_v11 = vpop.f32.mrf.mxu0 }
 0x43c   : > { %v6818_v12 = vpop.f32.mrf.mxu1 }
 0x43d   : > { %v1442_v13 = vpop.f32.mrf.mxu0 }
 0x43e   : > { %v1680_v14 = vsel %vm723_vm2, %v1442_v13, -inf }
 0x43f   : > { %1681 = vmax.xlane.f32.xlu0 %v1680_v14  ;;  %v6833_v15 = vpop.f32.mrf.mxu0 }
 0x441   : > { %v1598_v16 = vpop.f32.mrf.mxu0 }
 0x442   : > { %v1686_v17 = vsel %vm723_vm2, %v1598_v16, -inf }
 0x443   : > { %1687 = vmax.xlane.f32.xlu0 %v1686_v17  ;;  %v6843_v18 = vpop.f32.mrf.mxu0 }
 0x47b   : > { %v1360_v19 = vpop.f32.mrf.mxu1 }
 0x47c   : > { %1367 = vst.msk [vmem:[#allocation2 + $0x18] sm:$0xff] %vm723_vm2, %v1360_v19 }
 0x47d   : > { %v6828_v20 = vpop.f32.mrf.mxu1 }
 0x47f   : > { %v1520_v21 = vpop.f32.mrf.mxu1 }
 0x480   : > { %v1683_v22 = vsel %vm723_vm2, %v1520_v21, -inf }
 0x481   : > { %1684 = vmax.xlane.f32.xlu1 %v1683_v22  ;;  %v6838_v23 = vpop.f32.mrf.mxu1 }
 0x483   : > { %v1676_v24 = vpop.f32.mrf.mxu1 }
 0x484   : > { %v1689_v25 = vsel %vm723_vm2, %v1676_v24, -inf }
 0x485   : > { %v6848_v26 = vpop.f32.mrf.mxu1  ;;  %1690 = vmax.xlane.f32.xlu0 %v1689_v25 }
 0x492   : > { %1802 = vrot.lane.b32.xlu1 %v7959_v63, %s7575_s14 }
 0x496   : > { %1879 = vrot.lane.b32.xlu1 %v7996_v44, %s7575_s14 }
 0x49a   : > { %1956 = vrot.lane.b32.xlu1 %v7967_v3, %s7575_s14 }
 0x49b   : > { %1725 = vrot.lane.b32.xlu0 %v7962_v1, %s7575_s14  ;;  %s6546_s14 = sshll.u32 %s7647_s25, 9  ;;  %s7589_s25 = smov [#allocation12]  }
 0x49e   : > { %2133 = vrot.lane.b32.xlu1 %v7911_v49, %s7576_s13 }
 0x49f   : > { %2055 = vrot.lane.b32.xlu0 %v7913_v51, %s7576_s13 }
 0x4c8   : > { %v1682_v27 = vpop.xlane.xlu0 %1681 }
 0x4c9   : > { %v1692_v28 = vsub.f32 %v1442_v13, %v1682_v27 }
 0x4cb   : > { %v1696_v29 = vmul.f32 1.442695, %v1692_v28 }
 0x4cc   : > { %v1688_v30 = vpop.xlane.xlu0 %1687 }
 0x4cd   : > { %7243 = vpow2.f32 %v1696_v29  ;;  %v1694_v31 = vsub.f32 %v1598_v16, %v1688_v30 }
 0x4cf   : > { %v1700_v32 = vmul.f32 1.442695, %v1694_v31 }
 0x4d1   : > { %7245 = vpow2.f32 %v1700_v32 }
 0x4da   : > { %v7244_v33 = vpop.eup %7243 }
 0x4db   : > { %v1704_v34 = vsel %vm723_vm2, %v7244_v33, 0.0 }
 0x4dc   : > { %1705 = vadd.xlane.f32.xlu0 %v1704_v34 }
 0x4de   : > { %v7246_v35 = vpop.eup %7245 }
 0x4df   : > { %v1710_v37 = vsel %vm723_vm2, %v7246_v35, 0.0 }
 0x4e0   : > { %1711 = vadd.xlane.f32.xlu0 %v1710_v37 }
 0x4f6   : > { %2053 = vrot.lane.b32.xlu0 %v7922_v54, %s7576_s13 }
 0x4fa   : > { %2211 = vrot.lane.b32.xlu0 %v7927_v56, %s7576_s13 }
 0x4fe   : > { %2209 = vrot.lane.b32.xlu0 %v7939_v58, %s7576_s13 }
 0x50a   : > { %v1685_v38 = vpop.xlane.xlu1 %1684 }
 0x50b   : > { %v1693_v40 = vsub.f32 %v1520_v21, %v1685_v38 }
 0x50d   : > { %v1698_v41 = vmul.f32 1.442695, %v1693_v40 }
 0x50e   : > { %v1803_v42 = vpop.permute.xlu1 %1802  ;;  %v1691_v43 = vpop.xlane.xlu0 %1690 }
 0x50f   : > { %7247 = vpow2.f32 %v1698_v41  ;;  %6855 = vmatpush3.msra.mxu1 %v1803_v42  ;;  %v1695_v48 = vsub.f32 %v1676_v24, %v1691_v43 }
 0x510   : > { %6864 = vmatprep.subr.mxu1 %v7573_v36 }
 0x511   : > { %v1702_v50 = vmul.f32 1.442695, %v1695_v48 }
 0x512   : > { %v1726_v45 = vpop.permute.xlu0 %1725  ;;  %v1880_v5 = vpop.permute.xlu1 %1879 }
 0x513   : > { %6850 = vmatpush3.msra.mxu0 %v1726_v45  ;;  %7249 = vpow2.f32 %v1702_v50 }
 0x514   : > { %6859 = vmatprep.subr.mxu0 %v7573_v36 }
 0x516   : > { %v2056_v60 = vpop.permute.xlu0 %2055  ;;  %v1957_v10 = vpop.permute.xlu1 %1956 }
 0x51a   : > { %v2134_v11 = vpop.permute.xlu1 %2133 }
 0x51c   : > { %v7248_v46 = vpop.eup %7247 }
 0x51d   : > { %v1707_v47 = vsel %vm723_vm2, %v7248_v46, 0.0 }
 0x51e   : > { %1708 = vadd.xlane.f32.xlu1 %v1707_v47 }
 0x520   : > { %v7250_v53 = vpop.eup %7249 }
 0x521   : > { %v1713_v55 = vsel %vm723_vm2, %v7250_v53, 0.0 }
 0x52f   : > { %2131 = vrot.lane.b32.xlu1 %v7917_v52, %s7576_s13 }
 0x533   : > { %2289 = vrot.lane.b32.xlu1 %v7933_v57, %s7576_s13 }
 0x557   : > { %1714 = vadd.xlane.f32.xlu1 %v1713_v55 }
 0x565   : > { %v1706_v61 = vpop.xlane.xlu0 %1705 }
 0x566   : > { %7251 = vrcp.f32 %v1706_v61 }
 0x568   : > { %2287 = vrot.lane.b32.xlu1 %v7948_v59, %s7576_s13 }
 0x569   : > { %v1712_v62 = vpop.xlane.xlu0 %1711 }
 0x56a   : > { %7253 = vrcp.f32 %v1712_v62 }
 0x56d   : > { %v2054_v4 = vpop.permute.xlu0 %2053 }
 0x571   : > { %v2212_v8 = vpop.permute.xlu0 %2211 }
 0x573   : > { %v7252_v0 = vpop.eup %7251 }
 0x574   : > { %v1720_v2 = vmul.f32 %v7252_v0, %v7244_v33 }
 0x575   : > { %v2210_v9 = vpop.permute.xlu0 %2209 }
 0x576   : > { %6852 = vmatmul.mubr.msk.f32.vlgmr.msra.gmra.mxu0 %vm723_vm2, %v1720_v2 }
 0x577   : > { %v7254_v6 = vpop.eup %7253  ;;  %6860 = vmatpush3.msra.mxu0 %v1880_v5  ;;  %6861 = vmatprep.mubr.msk.f32.mxu0 %vm7574_vm1, %v7573_v36 }
 0x578   : > { %6869 = vmatprep.subr.mxu0 %v7573_v36  ;;  %v1722_v7 = vmul.f32 %v7254_v6, %v7246_v35 }
 0x57a   : > { %6862 = vmatmul.mubr.msk.f32.vlgmr.msra.gmra.mxu0 %vm723_vm2, %v1722_v7 }
 0x57b   : > { %6870 = vmatpush3.xpose.msk.msra.mxu0 %vm723_vm2, %v2056_v60  ;;  %6871 = vmatprep.mubr.msk.f32.mxu0 %vm7574_vm1, %v7573_v36 }
 0x57c   : > { %6879 = vmatprep.subr.mxu0 %v7573_v36 }
 0x57e   : > { %6872 = vmatmul.mubr.msk.f32.vlgmr.msra.gmra.mxu0 %vm723_vm2, %v2054_v4 }
 0x57f   : > { %6880 = vmatpush3.xpose.msk.msra.mxu0 %vm723_vm2, %v2212_v8  ;;  %6881 = vmatprep.mubr.msk.f32.mxu0 %vm7574_vm1, %v7573_v36 }
 0x580   : > { %6889 = vmatprep.subr.mxu0 %v7573_v36 }
 0x582   : > { %6882 = vmatmul.mubr.msk.f32.vlgmr.msra.gmra.mxu0 %vm723_vm2, %v2210_v9 }
 0x583   : > { %6891 = vmatprep.mubr.msk.f32.mxu0 %vm7574_vm1, %v7573_v36 }
 0x5a7   : > { %v1709_v12 = vpop.xlane.xlu1 %1708 }
 0x5a8   : > { %7255 = vrcp.f32 %v1709_v12 }
 0x5ab   : > { %v2132_v15 = vpop.permute.xlu1 %2131 }
 0x5af   : > { %v2290_v16 = vpop.permute.xlu1 %2289 }
 0x5b5   : > { %v7256_v13 = vpop.eup %7255 }
 0x5b6   : > { %v1721_v14 = vmul.f32 %v7256_v13, %v7248_v46 }
 0x5b8   : > { %6857 = vmatmul.mubr.msk.f32.vlgmr.msra.gmra.mxu1 %vm723_vm2, %v1721_v14 }
 0x5b9   : > { %6865 = vmatpush3.msra.mxu1 %v1957_v10  ;;  %6866 = vmatprep.mubr.msk.f32.mxu1 %vm7574_vm1, %v7573_v36 }
 0x5ba   : > { %6874 = vmatprep.subr.mxu1 %v7573_v36 }
 0x5e0   : > { %v1715_v17 = vpop.xlane.xlu1 %1714 }
 0x5e1   : > { %7257 = vrcp.f32 %v1715_v17 }
 0x5e4   : > { %v2288_v20 = vpop.permute.xlu1 %2287 }
 0x5ee   : > { %v7258_v18 = vpop.eup %7257 }
 0x5ef   : > { %v1723_v19 = vmul.f32 %v7258_v18, %v7250_v53 }
 0x5f1   : > { %6867 = vmatmul.mubr.msk.f32.vlgmr.msra.gmra.mxu1 %vm723_vm2, %v1723_v19 }
 0x5f2   : > { %6875 = vmatpush3.xpose.msk.msra.mxu1 %vm723_vm2, %v2134_v11  ;;  %6876 = vmatprep.mubr.msk.f32.mxu1 %vm7574_vm1, %v7573_v36 }
 0x5f3   : > { %6884 = vmatprep.subr.mxu1 %v7573_v36 }
 0x5f5   : > { %6877 = vmatmul.mubr.msk.f32.vlgmr.msra.gmra.mxu1 %vm723_vm2, %v2132_v15 }
 0x5f6   : > { %6885 = vmatpush3.xpose.msk.msra.mxu1 %vm723_vm2, %v2290_v16  ;;  %6886 = vmatprep.mubr.msk.f32.mxu1 %vm7574_vm1, %v7573_v36 }
 0x5f7   : > { %6894 = vmatprep.subr.mxu1 %v7573_v36 }
 0x5f9   : > { %6887 = vmatmul.mubr.msk.f32.vlgmr.msra.gmra.mxu1 %vm723_vm2, %v2288_v20 }
 0x5fa   : > { %6896 = vmatprep.mubr.msk.f32.mxu1 %vm7574_vm1, %v7573_v36 }
 0x636   : > { %v8106_v21 = vpop.f32.mrf.mxu0 }
 0x638   : > { %v6853_v22 = vpop.f32.mrf.mxu0 }
 0x63a   : > { %v8108_v23 = vpop.f32.mrf.mxu0 }
 0x63c   : > { %v6863_v24 = vpop.f32.mrf.mxu0 }
 0x63e   : > { %v2127_v25 = vpop.f32.mrf.mxu0 }
 0x63f   : > { %v2365_v26 = vsel %vm723_vm2, %v2127_v25, -inf }
 0x640   : > { %2366 = vmax.xlane.f32.xlu0 %v2365_v26  ;;  %v6873_v27 = vpop.f32.mrf.mxu0 }
 0x642   : > { %v2283_v28 = vpop.f32.mrf.mxu0 }
 0x643   : > { %v2371_v29 = vsel %vm723_vm2, %v2283_v28, -inf }
 0x644   : > { %2372 = vmax.xlane.f32.xlu0 %v2371_v29  ;;  %v6883_v30 = vpop.f32.mrf.mxu0 }
 0x678   : > { %v8112_v31 = vpop.f32.mrf.mxu1 }
 0x67a   : > { %v6858_v32 = vpop.f32.mrf.mxu1 }
 0x6b1   : > { %v8114_v33 = vpop.f32.mrf.mxu1 }
 0x6b3   : > { %v6868_v34 = vpop.f32.mrf.mxu1 }
 0x6b5   : > { %v2205_v35 = vpop.f32.mrf.mxu1 }
 0x6b6   : > { %v2368_v37 = vsel %vm723_vm2, %v2205_v35, -inf }
 0x6b7   : > { %2369 = vmax.xlane.f32.xlu1 %v2368_v37  ;;  %v6878_v38 = vpop.f32.mrf.mxu1 }
 0x6b9   : > { %v2361_v40 = vpop.f32.mrf.mxu1 }
 0x6ba   : > { %v2374_v41 = vsel %vm723_vm2, %v2361_v40, -inf }
 0x6bb   : > { %v6888_v42 = vpop.f32.mrf.mxu1  ;;  %2375 = vmax.xlane.f32.xlu0 %v2374_v41 }
 0x6c8   : > { %2485 = vrot.lane.b32.xlu1 %v7959_v63, %s7576_s13 }
 0x6c9   : > { %v2367_v43 = vpop.xlane.xlu0 %2366 }
 0x6ca   : > { %v2377_v45 = vsub.f32 %v2127_v25, %v2367_v43 }
 0x6cc   : > { %2561 = vrot.lane.b32.xlu1 %v7996_v44, %s7576_s13  ;;  %v2381_v47 = vmul.f32 1.442695, %v2377_v45 }
 0x6cd   : > { %v2373_v46 = vpop.xlane.xlu0 %2372 }
 0x6ce   : > { %v2379_v48 = vsub.f32 %v2283_v28, %v2373_v46  ;;  %7259 = vpow2.f32 %v2381_v47 }
 0x6d0   : > { %2637 = vrot.lane.b32.xlu1 %v7967_v3, %s7576_s13  ;;  %v2385_v50 = vmul.f32 1.442695, %v2379_v48 }
 0x6d1   : > { %2409 = vrot.lane.b32.xlu0 %v7962_v1, %s7576_s13 }
 0x6d2   : > { %7261 = vpow2.f32 %v2385_v50 }
 0x6d4   : > { %2814 = vrot.lane.b32.xlu1 %v7911_v49, %s7577_s20 }
 0x6d5   : > { %2736 = vrot.lane.b32.xlu0 %v7913_v51, %s7577_s20 }
 0x6db   : > { %v7260_v53 = vpop.eup %7259 }
 0x6dc   : > { %v2389_v55 = vsel %vm723_vm2, %v7260_v53, 0.0 }
 0x6df   : > { %v7262_v60 = vpop.eup %7261 }
 0x6e0   : > { %v2395_v61 = vsel %vm723_vm2, %v7262_v60, 0.0 }
 0x6f4   : > { %2390 = vadd.xlane.f32.xlu0 %v2389_v55 }
 0x6f8   : > { %2396 = vadd.xlane.f32.xlu0 %v2395_v61 }
 0x70e   : > { %2734 = vrot.lane.b32.xlu0 %v7922_v54, %s7577_s20 }
 0x712   : > { %2892 = vrot.lane.b32.xlu0 %v7927_v56, %s7577_s20 }
 0x716   : > { %2890 = vrot.lane.b32.xlu0 %v7939_v58, %s7577_s20 }
 0x740   : > { %v2370_v62 = vpop.xlane.xlu1 %2369 }
 0x741   : > { %v2378_v0 = vsub.f32 %v2205_v35, %v2370_v62 }
 0x743   : > { %v2383_v2 = vmul.f32 1.442695, %v2378_v0 }
 0x744   : > { %v2486_v4 = vpop.permute.xlu1 %2485  ;;  %v2376_v5 = vpop.xlane.xlu0 %2375 }
 0x745   : > { %7263 = vpow2.f32 %v2383_v2  ;;  %6895 = vmatpush3.msra.mxu1 %v2486_v4  ;;  %v2380_v9 = vsub.f32 %v2361_v40, %v2376_v5 }
 0x746   : > { %6904 = vmatprep.subr.mxu1 %v7573_v36 }
 0x747   : > { %v2387_v10 = vmul.f32 1.442695, %v2380_v9 }
 0x748   : > { %v2410_v6 = vpop.permute.xlu0 %2409  ;;  %v2562_v19 = vpop.permute.xlu1 %2561 }
 0x749   : > { %6890 = vmatpush3.msra.mxu0 %v2410_v6  ;;  %7265 = vpow2.f32 %v2387_v10 }
 0x74a   : > { %6899 = vmatprep.subr.mxu0 %v7573_v36 }
 0x74c   : > { %v2737_v11 = vpop.permute.xlu0 %2736  ;;  %v2638_v26 = vpop.permute.xlu1 %2637 }
 0x750   : > { %v2815_v27 = vpop.permute.xlu1 %2814 }
 0x752   : > { %v7264_v7 = vpop.eup %7263 }
 0x753   : > { %v2392_v8 = vsel %vm723_vm2, %v7264_v7, 0.0 }
 0x754   : > { %2393 = vadd.xlane.f32.xlu1 %v2392_v8 }
 0x756   : > { %v7266_v14 = vpop.eup %7265 }
 0x757   : > { %v2398_v16 = vsel %vm723_vm2, %v7266_v14, 0.0 }
 0x765   : > { %2812 = vrot.lane.b32.xlu1 %v7917_v52, %s7577_s20 }
 0x769   : > { %2970 = vrot.lane.b32.xlu1 %v7933_v57, %s7577_s20 }
 0x77d   : > { %v2391_v12 = vpop.xlane.xlu0 %2390 }
 0x77e   : > { %7267 = vrcp.f32 %v2391_v12 }
 0x781   : > { %v2397_v13 = vpop.xlane.xlu0 %2396 }
 0x782   : > { %7269 = vrcp.f32 %v2397_v13 }
 0x785   : > { %v2735_v18 = vpop.permute.xlu0 %2734 }
 0x789   : > { %v2893_v24 = vpop.permute.xlu0 %2892 }
 0x78b   : > { %v7268_v15 = vpop.eup %7267 }
 0x78c   : > { %v2405_v17 = vmul.f32 %v7268_v15, %v7260_v53 }
 0x78d   : > { %2399 = vadd.xlane.f32.xlu1 %v2398_v16  ;;  %v2891_v25 = vpop.permute.xlu0 %2890 }
 0x78e   : > { %6892 = vmatmul.mubr.msk.f32.vlgmr.msra.gmra.mxu0 %vm723_vm2, %v2405_v17 }
 0x78f   : > { %v7270_v20 = vpop.eup %7269  ;;  %6900 = vmatpush3.msra.mxu0 %v2562_v19  ;;  %6901 = vmatprep.mubr.msk.f32.mxu0 %vm7574_vm1, %v7573_v36 }
 0x790   : > { %6909 = vmatprep.subr.mxu0 %v7573_v36  ;;  %v2407_v22 = vmul.f32 %v7270_v20, %v7262_v60 }
 0x792   : > { %6902 = vmatmul.mubr.msk.f32.vlgmr.msra.gmra.mxu0 %vm723_vm2, %v2407_v22 }
 0x793   : > { %6910 = vmatpush3.xpose.msk.msra.mxu0 %vm723_vm2, %v2737_v11  ;;  %6911 = vmatprep.mubr.msk.f32.mxu0 %vm7574_vm1, %v7573_v36 }
 0x794   : > { %6919 = vmatprep.subr.mxu0 %v7573_v36 }
 0x796   : > { %6912 = vmatmul.mubr.msk.f32.vlgmr.msra.gmra.mxu0 %vm723_vm2, %v2735_v18 }
 0x797   : > { %6920 = vmatpush3.xpose.msk.msra.mxu0 %vm723_vm2, %v2893_v24  ;;  %6921 = vmatprep.mubr.msk.f32.mxu0 %vm7574_vm1, %v7573_v36 }
 0x798   : > { %6929 = vmatprep.subr.mxu0 %v7573_v36 }
 0x79a   : > { %6922 = vmatmul.mubr.msk.f32.vlgmr.msra.gmra.mxu0 %vm723_vm2, %v2891_v25 }
 0x79b   : > { %6931 = vmatprep.mubr.msk.f32.mxu0 %vm7574_vm1, %v7573_v36 }
 0x79e   : > { %2968 = vrot.lane.b32.xlu1 %v7948_v59, %s7577_s20 }
 0x7dd   : > { %v2394_v28 = vpop.xlane.xlu1 %2393 }
 0x7de   : > { %7271 = vrcp.f32 %v2394_v28 }
 0x7e1   : > { %v2813_v32 = vpop.permute.xlu1 %2812 }
 0x7e5   : > { %v2971_v34 = vpop.permute.xlu1 %2970 }
 0x7eb   : > { %v7272_v29 = vpop.eup %7271 }
 0x7ec   : > { %v2406_v30 = vmul.f32 %v7272_v29, %v7264_v7 }
 0x7ee   : > { %6897 = vmatmul.mubr.msk.f32.vlgmr.msra.gmra.mxu1 %vm723_vm2, %v2406_v30 }
 0x7ef   : > { %6905 = vmatpush3.msra.mxu1 %v2638_v26  ;;  %6906 = vmatprep.mubr.msk.f32.mxu1 %vm7574_vm1, %v7573_v36 }
 0x7f0   : > { %6914 = vmatprep.subr.mxu1 %v7573_v36 }
 0x816   : > { %v2400_v35 = vpop.xlane.xlu1 %2399 }
 0x817   : > { %7273 = vrcp.f32 %v2400_v35 }
 0x81a   : > { %v2969_v40 = vpop.permute.xlu1 %2968 }
 0x824   : > { %v7274_v37 = vpop.eup %7273 }
 0x825   : > { %v2408_v38 = vmul.f32 %v7274_v37, %v7266_v14 }
 0x827   : > { %6907 = vmatmul.mubr.msk.f32.vlgmr.msra.gmra.mxu1 %vm723_vm2, %v2408_v38 }
 0x828   : > { %6915 = vmatpush3.xpose.msk.msra.mxu1 %vm723_vm2, %v2815_v27  ;;  %6916 = vmatprep.mubr.msk.f32.mxu1 %vm7574_vm1, %v7573_v36 }
 0x829   : > { %6924 = vmatprep.subr.mxu1 %v7573_v36 }
 0x82b   : > { %6917 = vmatmul.mubr.msk.f32.vlgmr.msra.gmra.mxu1 %vm723_vm2, %v2813_v32 }
 0x82c   : > { %6925 = vmatpush3.xpose.msk.msra.mxu1 %vm723_vm2, %v2971_v34  ;;  %6926 = vmatprep.mubr.msk.f32.mxu1 %vm7574_vm1, %v7573_v36 }
 0x82d   : > { %6934 = vmatprep.subr.mxu1 %v7573_v36 }
 0x82f   : > { %6927 = vmatmul.mubr.msk.f32.vlgmr.msra.gmra.mxu1 %vm723_vm2, %v2969_v40 }
 0x830   : > { %6936 = vmatprep.mubr.msk.f32.mxu1 %vm7574_vm1, %v7573_v36 }
 0x84e   : > { %v8182_v41 = vpop.f32.mrf.mxu0 }
 0x850   : > { %v6893_v42 = vpop.f32.mrf.mxu0 }
 0x852   : > { %v8184_v43 = vpop.f32.mrf.mxu0 }
 0x854   : > { %v6903_v45 = vpop.f32.mrf.mxu0 }
 0x856   : > { %v2808_v46 = vpop.f32.mrf.mxu0 }
 0x857   : > { %v3046_v47 = vsel %vm723_vm2, %v2808_v46, -inf }
 0x858   : > { %3047 = vmax.xlane.f32.xlu0 %v3046_v47  ;;  %v6913_v48 = vpop.f32.mrf.mxu0 }
 0x85a   : > { %v2964_v50 = vpop.f32.mrf.mxu0 }
 0x85b   : > { %v3052_v53 = vsel %vm723_vm2, %v2964_v50, -inf }
 0x85c   : > { %3053 = vmax.xlane.f32.xlu0 %v3052_v53  ;;  %v6923_v55 = vpop.f32.mrf.mxu0 }
 0x8ae   : > { %v8188_v60 = vpop.f32.mrf.mxu1 }
 0x8b0   : > { %v6898_v61 = vpop.f32.mrf.mxu1 }
 0x8e1   : > { %v3048_v9 = vpop.xlane.xlu0 %3047 }
 0x8e2   : > { %v3058_v10 = vsub.f32 %v2808_v46, %v3048_v9 }
 0x8e4   : > { %v3062_v12 = vmul.f32 1.442695, %v3058_v10 }
 0x8e5   : > { %v3054_v11 = vpop.xlane.xlu0 %3053 }
 0x8e6   : > { %v3060_v13 = vsub.f32 %v2964_v50, %v3054_v11  ;;  %7275 = vpow2.f32 %v3062_v12 }
 0x8e7   : > { %v8190_v62 = vpop.f32.mrf.mxu1 }
 0x8e8   : > { %v3066_v14 = vmul.f32 1.442695, %v3060_v13 }
 0x8e9   : > { %v6908_v0 = vpop.f32.mrf.mxu1 }
 0x8ea   : > { %7277 = vpow2.f32 %v3066_v14 }
 0x8eb   : > { %v2886_v2 = vpop.f32.mrf.mxu1 }
 0x8ec   : > { %v3049_v4 = vsel %vm723_vm2, %v2886_v2, -inf }
 0x8ed   : > { %3050 = vmax.xlane.f32.xlu1 %v3049_v4  ;;  %v6918_v5 = vpop.f32.mrf.mxu1 }
 0x8ef   : > { %v3042_v6 = vpop.f32.mrf.mxu1 }
 0x8f0   : > { %v3055_v7 = vsel %vm723_vm2, %v3042_v6, -inf }
 0x8f1   : > { %v6928_v8 = vpop.f32.mrf.mxu1  ;;  %3056 = vmax.xlane.f32.xlu0 %v3055_v7 }
 0x8f3   : > { %v7276_v15 = vpop.eup %7275 }
 0x8f4   : > { %v3070_v16 = vsel %vm723_vm2, %v7276_v15, 0.0 }
 0x8f7   : > { %v7278_v17 = vpop.eup %7277 }
 0x8f8   : > { %v3076_v18 = vsel %vm723_vm2, %v7278_v17, 0.0 }
 0x8fe   : > { %3166 = vrot.lane.b32.xlu1 %v7959_v63, %s7577_s20 }
 0x902   : > { %3242 = vrot.lane.b32.xlu1 %v7996_v44, %s7577_s20 }
 0x906   : > { %3318 = vrot.lane.b32.xlu1 %v7967_v3, %s7577_s20 }
 0x907   : > { %3090 = vrot.lane.b32.xlu0 %v7962_v1, %s7577_s20  ;;  %s8623_s20 = scalar_lea.hbm %s8674_s6, %s6546_s14 }
 0x90a   : > { %3495 = vrot.lane.b32.xlu1 %v7911_v49, %s7578_s1 }
 0x90b   : > { %3417 = vrot.lane.b32.xlu0 %v7913_v51, %s7578_s1 }
 0x92a   : > { %3071 = vadd.xlane.f32.xlu0 %v3070_v16 }
 0x92e   : > { %3077 = vadd.xlane.f32.xlu0 %v3076_v18 }
 0x944   : > { %3415 = vrot.lane.b32.xlu0 %v7922_v54, %s7578_s1 }
 0x948   : > { %3573 = vrot.lane.b32.xlu0 %v7927_v56, %s7578_s1 }
 0x94c   : > { %3571 = vrot.lane.b32.xlu0 %v7939_v58, %s7578_s1 }
 0x976   : > { %v3051_v19 = vpop.xlane.xlu1 %3050 }
 0x977   : > { %v3059_v20 = vsub.f32 %v2886_v2, %v3051_v19 }
 0x979   : > { %v3064_v22 = vmul.f32 1.442695, %v3059_v20 }
 0x97a   : > { %v3167_v24 = vpop.permute.xlu1 %3166  ;;  %v3057_v25 = vpop.xlane.xlu0 %3056 }
 0x97b   : > { %7279 = vpow2.f32 %v3064_v22  ;;  %6935 = vmatpush3.msra.mxu1 %v3167_v24  ;;  %v3061_v29 = vsub.f32 %v3042_v6, %v3057_v25 }
 0x97c   : > { %6944 = vmatprep.subr.mxu1 %v7573_v36 }
 0x97d   : > { %v3068_v30 = vmul.f32 1.442695, %v3061_v29 }
 0x97e   : > { %v3091_v26 = vpop.permute.xlu0 %3090  ;;  %v3243_v46 = vpop.permute.xlu1 %3242 }
 0x97f   : > { %6930 = vmatpush3.msra.mxu0 %v3091_v26  ;;  %7281 = vpow2.f32 %v3068_v30 }
 0x980   : > { %6939 = vmatprep.subr.mxu0 %v7573_v36 }
 0x982   : > { %v3418_v32 = vpop.permute.xlu0 %3417  ;;  %v3319_v55 = vpop.permute.xlu1 %3318 }
 0x986   : > { %v3496_v61 = vpop.permute.xlu1 %3495 }
 0x988   : > { %v7280_v27 = vpop.eup %7279 }
 0x989   : > { %v3073_v28 = vsel %vm723_vm2, %v7280_v27, 0.0 }
 0x98a   : > { %3074 = vadd.xlane.f32.xlu1 %v3073_v28 }
 0x98c   : > { %v7282_v37 = vpop.eup %7281 }
 0x98d   : > { %v3079_v40 = vsel %vm723_vm2, %v7282_v37, 0.0 }
 0x99b   : > { %3493 = vrot.lane.b32.xlu1 %v7917_v52, %s7578_s1 }
 0x99f   : > { %3651 = vrot.lane.b32.xlu1 %v7933_v57, %s7578_s1 }
 0x9b3   : > { %v3072_v34 = vpop.xlane.xlu0 %3071 }
 0x9b4   : > { %7283 = vrcp.f32 %v3072_v34 }
 0x9b7   : > { %v3078_v35 = vpop.xlane.xlu0 %3077 }
 0x9b8   : > { %7285 = vrcp.f32 %v3078_v35 }
 0x9bb   : > { %v3416_v45 = vpop.permute.xlu0 %3415 }
 0x9bf   : > { %v3574_v50 = vpop.permute.xlu0 %3573 }
 0x9c1   : > { %v7284_v38 = vpop.eup %7283 }
 0x9c2   : > { %v3086_v42 = vmul.f32 %v7284_v38, %v7276_v15 }
 0x9c3   : > { %3080 = vadd.xlane.f32.xlu1 %v3079_v40  ;;  %v3572_v53 = vpop.permute.xlu0 %3571 }
 0x9c4   : > { %6932 = vmatmul.mubr.msk.f32.vlgmr.msra.gmra.mxu0 %vm723_vm2, %v3086_v42 }
 0x9c5   : > { %v7286_v47 = vpop.eup %7285  ;;  %6940 = vmatpush3.msra.mxu0 %v3243_v46  ;;  %6941 = vmatprep.mubr.msk.f32.mxu0 %vm7574_vm1, %v7573_v36 }
 0x9c6   : > { %6949 = vmatprep.subr.mxu0 %v7573_v36  ;;  %v3088_v48 = vmul.f32 %v7286_v47, %v7278_v17 }
 0x9c8   : > { %6942 = vmatmul.mubr.msk.f32.vlgmr.msra.gmra.mxu0 %vm723_vm2, %v3088_v48 }
 0x9c9   : > { %6950 = vmatpush3.xpose.msk.msra.mxu0 %vm723_vm2, %v3418_v32  ;;  %6951 = vmatprep.mubr.msk.f32.mxu0 %vm7574_vm1, %v7573_v36 }
 0x9ca   : > { %6959 = vmatprep.subr.mxu0 %v7573_v36 }
 0x9cc   : > { %6952 = vmatmul.mubr.msk.f32.vlgmr.msra.gmra.mxu0 %vm723_vm2, %v3416_v45 }
 0x9cd   : > { %6960 = vmatpush3.xpose.msk.msra.mxu0 %vm723_vm2, %v3574_v50  ;;  %6961 = vmatprep.mubr.msk.f32.mxu0 %vm7574_vm1, %v7573_v36 }
 0x9ce   : > { %6969 = vmatprep.subr.mxu0 %v7573_v36 }
 0x9d0   : > { %6962 = vmatmul.mubr.msk.f32.vlgmr.msra.gmra.mxu0 %vm723_vm2, %v3572_v53 }
 0x9d1   : > { %6971 = vmatprep.mubr.msk.f32.mxu0 %vm7574_vm1, %v7573_v36 }
 0x9d4   : > { %3649 = vrot.lane.b32.xlu1 %v7948_v59, %s7578_s1 }
 0xa13   : > { %v3075_v0 = vpop.xlane.xlu1 %3074 }
 0xa14   : > { %7287 = vrcp.f32 %v3075_v0 }
 0xa17   : > { %v3494_v5 = vpop.permute.xlu1 %3493 }
 0xa1b   : > { %v3652_v6 = vpop.permute.xlu1 %3651 }
 0xa21   : > { %v7288_v2 = vpop.eup %7287 }
 0xa22   : > { %v3087_v4 = vmul.f32 %v7288_v2, %v7280_v27 }
 0xa24   : > { %6937 = vmatmul.mubr.msk.f32.vlgmr.msra.gmra.mxu1 %vm723_vm2, %v3087_v4 }
 0xa25   : > { %6945 = vmatpush3.msra.mxu1 %v3319_v55  ;;  %6946 = vmatprep.mubr.msk.f32.mxu1 %vm7574_vm1, %v7573_v36 }
 0xa26   : > { %6954 = vmatprep.subr.mxu1 %v7573_v36 }
 0xa4c   : > { %v3081_v7 = vpop.xlane.xlu1 %3080 }
 0xa4d   : > { %7289 = vrcp.f32 %v3081_v7 }
 0xa50   : > { %v3650_v10 = vpop.permute.xlu1 %3649 }
 0xa5a   : > { %v7290_v8 = vpop.eup %7289 }
 0xa5b   : > { %v3089_v9 = vmul.f32 %v7290_v8, %v7282_v37 }
 0xa5d   : > { %6947 = vmatmul.mubr.msk.f32.vlgmr.msra.gmra.mxu1 %vm723_vm2, %v3089_v9 }
 0xa5e   : > { %6955 = vmatpush3.xpose.msk.msra.mxu1 %vm723_vm2, %v3496_v61  ;;  %6956 = vmatprep.mubr.msk.f32.mxu1 %vm7574_vm1, %v7573_v36 }
 0xa5f   : > { %6964 = vmatprep.subr.mxu1 %v7573_v36 }
 0xa61   : > { %6957 = vmatmul.mubr.msk.f32.vlgmr.msra.gmra.mxu1 %vm723_vm2, %v3494_v5 }
 0xa62   : > { %6965 = vmatpush3.xpose.msk.msra.mxu1 %vm723_vm2, %v3652_v6  ;;  %6966 = vmatprep.mubr.msk.f32.mxu1 %vm7574_vm1, %v7573_v36 }
 0xa63   : > { %6974 = vmatprep.subr.mxu1 %v7573_v36 }
 0xa65   : > { %6967 = vmatmul.mubr.msk.f32.vlgmr.msra.gmra.mxu1 %vm723_vm2, %v3650_v10 }
 0xa66   : > { %6976 = vmatprep.mubr.msk.f32.mxu1 %vm7574_vm1, %v7573_v36 }
 0xa84   : > { %v8258_v11 = vpop.f32.mrf.mxu0 }
 0xa86   : > { %v6933_v12 = vpop.f32.mrf.mxu0 }
 0xa88   : > { %v8260_v13 = vpop.f32.mrf.mxu0 }
 0xa8a   : > { %v6943_v14 = vpop.f32.mrf.mxu0 }
 0xa8c   : > { %v3489_v15 = vpop.f32.mrf.mxu0 }
 0xa8d   : > { %v3727_v16 = vsel %vm723_vm2, %v3489_v15, -inf }
 0xa8e   : > { %3728 = vmax.xlane.f32.xlu0 %v3727_v16  ;;  %v6953_v17 = vpop.f32.mrf.mxu0 }
 0xa90   : > { %v3645_v18 = vpop.f32.mrf.mxu0 }
 0xa91   : > { %v3733_v19 = vsel %vm723_vm2, %v3645_v18, -inf }
 0xa92   : > { %3734 = vmax.xlane.f32.xlu0 %v3733_v19  ;;  %v6963_v20 = vpop.f32.mrf.mxu0 }
 0xae4   : > { %v8264_v22 = vpop.f32.mrf.mxu1 }
 0xae6   : > { %v6938_v24 = vpop.f32.mrf.mxu1 }
 0xb17   : > { %v3729_v35 = vpop.xlane.xlu0 %3728 }
 0xb18   : > { %v3739_v37 = vsub.f32 %v3489_v15, %v3729_v35 }
 0xb1a   : > { %v3743_v40 = vmul.f32 1.442695, %v3739_v37 }
 0xb1b   : > { %v3735_v38 = vpop.xlane.xlu0 %3734 }
 0xb1c   : > { %v3741_v42 = vsub.f32 %v3645_v18, %v3735_v38  ;;  %7291 = vpow2.f32 %v3743_v40 }
 0xb1d   : > { %v8266_v25 = vpop.f32.mrf.mxu1 }
 0xb1e   : > { %v3747_v45 = vmul.f32 1.442695, %v3741_v42 }
 0xb1f   : > { %v6948_v26 = vpop.f32.mrf.mxu1 }
 0xb20   : > { %7293 = vpow2.f32 %v3747_v45 }
 0xb21   : > { %v3567_v27 = vpop.f32.mrf.mxu1 }
 0xb22   : > { %v3730_v28 = vsel %vm723_vm2, %v3567_v27, -inf }
 0xb23   : > { %3731 = vmax.xlane.f32.xlu1 %v3730_v28  ;;  %v6958_v29 = vpop.f32.mrf.mxu1 }
 0xb25   : > { %v3723_v30 = vpop.f32.mrf.mxu1 }
 0xb26   : > { %v3736_v32 = vsel %vm723_vm2, %v3723_v30, -inf }
 0xb27   : > { %v6968_v34 = vpop.f32.mrf.mxu1  ;;  %3737 = vmax.xlane.f32.xlu0 %v3736_v32 }
 0xb29   : > { %v7292_v46 = vpop.eup %7291 }
 0xb2a   : > { %v3751_v47 = vsel %vm723_vm2, %v7292_v46, 0.0 }
 0xb2d   : > { %v7294_v48 = vpop.eup %7293 }
 0xb2e   : > { %v3757_v50 = vsel %vm723_vm2, %v7294_v48, 0.0 }
 0xb34   : > { %3847 = vrot.lane.b32.xlu1 %v7959_v63, %s7578_s1 }
 0xb38   : > { %3923 = vrot.lane.b32.xlu1 %v7996_v44, %s7578_s1 }
 0xb3c   : > { %3999 = vrot.lane.b32.xlu1 %v7967_v3, %s7578_s1 }
 0xb3d   : > { %3771 = vrot.lane.b32.xlu0 %v7962_v1, %s7578_s1  ;;  %s6257_s1 = scalar_lea.sflag [#allocation5], %s7846_s18 }
 0xb40   : > { %4176 = vrot.lane.b32.xlu1 %v7911_v49, %s7579_s17 }
 0xb41   : > { %4098 = vrot.lane.b32.xlu0 %v7913_v51, %s7579_s17 }
 0xb60   : > { %3752 = vadd.xlane.f32.xlu0 %v3751_v47 }
 0xb64   : > { %3758 = vadd.xlane.f32.xlu0 %v3757_v50 }
 0xb7a   : > { %4096 = vrot.lane.b32.xlu0 %v7922_v54, %s7579_s17 }
 0xb7e   : > { %4254 = vrot.lane.b32.xlu0 %v7927_v56, %s7579_s17 }
 0xb82   : > { %4252 = vrot.lane.b32.xlu0 %v7939_v58, %s7579_s17 }
 0xbac   : > { %v3732_v53 = vpop.xlane.xlu1 %3731 }
 0xbad   : > { %v3740_v55 = vsub.f32 %v3567_v27, %v3732_v53 }
 0xbaf   : > { %v3745_v61 = vmul.f32 1.442695, %v3740_v55 }
 0xbb0   : > { %v3848_v0 = vpop.permute.xlu1 %3847  ;;  %v3738_v2 = vpop.xlane.xlu0 %3737 }
 0xbb1   : > { %7295 = vpow2.f32 %v3745_v61  ;;  %6975 = vmatpush3.msra.mxu1 %v3848_v0  ;;  %v3742_v7 = vsub.f32 %v3723_v30, %v3738_v2 }
 0xbb2   : > { %6984 = vmatprep.subr.mxu1 %v7573_v36 }
 0xbb3   : > { %v3749_v8 = vmul.f32 1.442695, %v3742_v7 }
 0xbb4   : > { %v3772_v4 = vpop.permute.xlu0 %3771  ;;  %v3924_v19 = vpop.permute.xlu1 %3923 }
 0xbb5   : > { %6970 = vmatpush3.msra.mxu0 %v3772_v4  ;;  %7297 = vpow2.f32 %v3749_v8 }
 0xbb6   : > { %6979 = vmatprep.subr.mxu0 %v7573_v36 }
 0xbb8   : > { %v4099_v9 = vpop.permute.xlu0 %4098  ;;  %v4000_v28 = vpop.permute.xlu1 %3999 }
 0xbbc   : > { %v4177_v29 = vpop.permute.xlu1 %4176 }
 0xbbe   : > { %v7296_v5 = vpop.eup %7295 }
 0xbbf   : > { %v3754_v6 = vsel %vm723_vm2, %v7296_v5, 0.0 }
 0xbc0   : > { %3755 = vadd.xlane.f32.xlu1 %v3754_v6 }
 0xbc2   : > { %v7298_v14 = vpop.eup %7297 }
 0xbc3   : > { %v3760_v16 = vsel %vm723_vm2, %v7298_v14, 0.0 }
 0xbd1   : > { %4174 = vrot.lane.b32.xlu1 %v7917_v52, %s7579_s17 }
 0xbd5   : > { %4332 = vrot.lane.b32.xlu1 %v7933_v57, %s7579_s17 }
 0xbe9   : > { %v3753_v10 = vpop.xlane.xlu0 %3752 }
 0xbea   : > { %7299 = vrcp.f32 %v3753_v10 }
 0xbed   : > { %v3759_v12 = vpop.xlane.xlu0 %3758 }
 0xbee   : > { %7301 = vrcp.f32 %v3759_v12 }
 0xbf1   : > { %v4097_v18 = vpop.permute.xlu0 %4096 }
 0xbf5   : > { %v4255_v26 = vpop.permute.xlu0 %4254 }
 0xbf7   : > { %v7300_v15 = vpop.eup %7299 }
 0xbf8   : > { %v3767_v17 = vmul.f32 %v7300_v15, %v7292_v46 }
 0xbf9   : > { %3761 = vadd.xlane.f32.xlu1 %v3760_v16  ;;  %v4253_v27 = vpop.permute.xlu0 %4252 }
 0xbfa   : > { %6972 = vmatmul.mubr.msk.f32.vlgmr.msra.gmra.mxu0 %vm723_vm2, %v3767_v17 }
 0xbfb   : > { %v7302_v20 = vpop.eup %7301  ;;  %6980 = vmatpush3.msra.mxu0 %v3924_v19  ;;  %6981 = vmatprep.mubr.msk.f32.mxu0 %vm7574_vm1, %v7573_v36 }
 0xbfc   : > { %6989 = vmatprep.subr.mxu0 %v7573_v36  ;;  %v3769_v24 = vmul.f32 %v7302_v20, %v7294_v48 }
 0xbfe   : > { %6982 = vmatmul.mubr.msk.f32.vlgmr.msra.gmra.mxu0 %vm723_vm2, %v3769_v24 }
 0xbff   : > { %6990 = vmatpush3.xpose.msk.msra.mxu0 %vm723_vm2, %v4099_v9  ;;  %6991 = vmatprep.mubr.msk.f32.mxu0 %vm7574_vm1, %v7573_v36 }
 0xc00   : > { %6999 = vmatprep.subr.mxu0 %v7573_v36 }
 0xc02   : > { %6992 = vmatmul.mubr.msk.f32.vlgmr.msra.gmra.mxu0 %vm723_vm2, %v4097_v18 }
 0xc03   : > { %7000 = vmatpush3.xpose.msk.msra.mxu0 %vm723_vm2, %v4255_v26  ;;  %7001 = vmatprep.mubr.msk.f32.mxu0 %vm7574_vm1, %v7573_v36 }
 0xc04   : > { %7009 = vmatprep.subr.mxu0 %v7573_v36 }
 0xc06   : > { %7002 = vmatmul.mubr.msk.f32.vlgmr.msra.gmra.mxu0 %vm723_vm2, %v4253_v27 }
 0xc07   : > { %7011 = vmatprep.mubr.msk.f32.mxu0 %vm7574_vm1, %v7573_v36 }
 0xc0a   : > { %4330 = vrot.lane.b32.xlu1 %v7948_v59, %s7579_s17 }
 0xc49   : > { %v3756_v30 = vpop.xlane.xlu1 %3755 }
 0xc4a   : > { %7303 = vrcp.f32 %v3756_v30 }
 0xc4d   : > { %v4175_v35 = vpop.permute.xlu1 %4174 }
 0xc51   : > { %v4333_v37 = vpop.permute.xlu1 %4332 }
 0xc57   : > { %v7304_v32 = vpop.eup %7303 }
 0xc58   : > { %v3768_v34 = vmul.f32 %v7304_v32, %v7296_v5 }
 0xc5a   : > { %6977 = vmatmul.mubr.msk.f32.vlgmr.msra.gmra.mxu1 %vm723_vm2, %v3768_v34 }
 0xc5b   : > { %6985 = vmatpush3.msra.mxu1 %v4000_v28  ;;  %6986 = vmatprep.mubr.msk.f32.mxu1 %vm7574_vm1, %v7573_v36 }
 0xc5c   : > { %6994 = vmatprep.subr.mxu1 %v7573_v36 }
 0xc82   : > { %v3762_v38 = vpop.xlane.xlu1 %3761 }
 0xc83   : > { %7305 = vrcp.f32 %v3762_v38 }
 0xc86   : > { %v4331_v45 = vpop.permute.xlu1 %4330 }
 0xc90   : > { %v7306_v40 = vpop.eup %7305 }
 0xc91   : > { %v3770_v42 = vmul.f32 %v7306_v40, %v7298_v14 }
 0xc93   : > { %6987 = vmatmul.mubr.msk.f32.vlgmr.msra.gmra.mxu1 %vm723_vm2, %v3770_v42 }
 0xc94   : > { %6995 = vmatpush3.xpose.msk.msra.mxu1 %vm723_vm2, %v4177_v29  ;;  %6996 = vmatprep.mubr.msk.f32.mxu1 %vm7574_vm1, %v7573_v36 }
 0xc95   : > { %7004 = vmatprep.subr.mxu1 %v7573_v36 }
 0xc97   : > { %6997 = vmatmul.mubr.msk.f32.vlgmr.msra.gmra.mxu1 %vm723_vm2, %v4175_v35 }
 0xc98   : > { %7005 = vmatpush3.xpose.msk.msra.mxu1 %vm723_vm2, %v4333_v37  ;;  %7006 = vmatprep.mubr.msk.f32.mxu1 %vm7574_vm1, %v7573_v36 }
 0xc99   : > { %7014 = vmatprep.subr.mxu1 %v7573_v36 }
 0xc9b   : > { %7007 = vmatmul.mubr.msk.f32.vlgmr.msra.gmra.mxu1 %vm723_vm2, %v4331_v45 }
 0xc9c   : > { %7016 = vmatprep.mubr.msk.f32.mxu1 %vm7574_vm1, %v7573_v36 }
 0xcba   : > { %v8334_v46 = vpop.f32.mrf.mxu0 }
 0xcbc   : > { %v6973_v47 = vpop.f32.mrf.mxu0 }
 0xcbe   : > { %v8336_v48 = vpop.f32.mrf.mxu0 }
 0xcc0   : > { %v6983_v50 = vpop.f32.mrf.mxu0 }
 0xcc2   : > { %v4170_v53 = vpop.f32.mrf.mxu0 }
 0xcc3   : > { %v4408_v55 = vsel %vm723_vm2, %v4170_v53, -inf }
 0xcc4   : > { %4409 = vmax.xlane.f32.xlu0 %v4408_v55  ;;  %v6993_v61 = vpop.f32.mrf.mxu0 }
 0xcc6   : > { %v4326_v0 = vpop.f32.mrf.mxu0 }
 0xcc7   : > { %v4414_v2 = vsel %vm723_vm2, %v4326_v0, -inf }
 0xcc8   : > { %4415 = vmax.xlane.f32.xlu0 %v4414_v2  ;;  %v7003_v4 = vpop.f32.mrf.mxu0 }
 0xd1a   : > { %v8340_v5 = vpop.f32.mrf.mxu1 }
 0xd1c   : > { %v6978_v6 = vpop.f32.mrf.mxu1 }
 0xd4d   : > { %v4410_v17 = vpop.xlane.xlu0 %4409 }
 0xd4e   : > { %v4420_v18 = vsub.f32 %v4170_v53, %v4410_v17 }
 0xd50   : > { %v4424_v20 = vmul.f32 1.442695, %v4420_v18 }
 0xd51   : > { %v4416_v19 = vpop.xlane.xlu0 %4415 }
 0xd52   : > { %v4422_v24 = vsub.f32 %v4326_v0, %v4416_v19  ;;  %7307 = vpow2.f32 %v4424_v20 }
 0xd53   : > { %v8342_v7 = vpop.f32.mrf.mxu1 }
 0xd54   : > { %v4428_v26 = vmul.f32 1.442695, %v4422_v24 }
 0xd55   : > { %v6988_v8 = vpop.f32.mrf.mxu1 }
 0xd56   : > { %7309 = vpow2.f32 %v4428_v26 }
 0xd57   : > { %v4248_v9 = vpop.f32.mrf.mxu1 }
 0xd58   : > { %v4411_v10 = vsel %vm723_vm2, %v4248_v9, -inf }
 0xd59   : > { %4412 = vmax.xlane.f32.xlu1 %v4411_v10  ;;  %v6998_v12 = vpop.f32.mrf.mxu1 }
 0xd5b   : > { %v4404_v14 = vpop.f32.mrf.mxu1 }
 0xd5c   : > { %v4417_v15 = vsel %vm723_vm2, %v4404_v14, -inf }
 0xd5d   : > { %v7008_v16 = vpop.f32.mrf.mxu1  ;;  %4418 = vmax.xlane.f32.xlu0 %v4417_v15 }
 0xd5f   : > { %v7308_v27 = vpop.eup %7307 }
 0xd60   : > { %v4432_v28 = vsel %vm723_vm2, %v7308_v27, 0.0 }
 0xd63   : > { %v7310_v29 = vpop.eup %7309 }
 0xd64   : > { %v4438_v30 = vsel %vm723_vm2, %v7310_v29, 0.0 }
 0xd6a   : > { %4528 = vrot.lane.b32.xlu1 %v7959_v63, %s7579_s17 }
 0xd6e   : > { %4604 = vrot.lane.b32.xlu1 %v7996_v44, %s7579_s17 }
 0xd72   : > { %4680 = vrot.lane.b32.xlu1 %v7967_v3, %s7579_s17 }
 0xd73   : > { %4452 = vrot.lane.b32.xlu0 %v7962_v1, %s7579_s17  ;;  %s7492_s17 = scalar_lea.vmem %s8617_s12, 512 }
 0xd74   : > { %p7493_p6 = scmp.ne.s32.totalorder %s8617_s12, %s7492_s17 }
 0xd76   : > { %4857 = vrot.lane.b32.xlu1 %v7911_v49, %s7580_s26  ;;  %p7494_p2 = pnand %p7493_p6, %p8714_p13 }
 0xd77   : > { %4779 = vrot.lane.b32.xlu0 %v7913_v51, %s7580_s26 }
 0xd78   : > { %p7495_p7 = pneg %p7494_p2 }
 0xd96   : > { %4433 = vadd.xlane.f32.xlu0 %v4432_v28 }
 0xd9a   : > { %4439 = vadd.xlane.f32.xlu0 %v4438_v30 }
 0xdb0   : > { %4777 = vrot.lane.b32.xlu0 %v7922_v54, %s7580_s26 }
 0xdb4   : > { %4935 = vrot.lane.b32.xlu0 %v7927_v56, %s7580_s26 }
 0xdb8   : > { %4933 = vrot.lane.b32.xlu0 %v7939_v58, %s7580_s26 }
 0xde2   : > { %v4413_v32 = vpop.xlane.xlu1 %4412 }
 0xde3   : > { %v4421_v34 = vsub.f32 %v4248_v9, %v4413_v32 }
 0xde5   : > { %v4426_v35 = vmul.f32 1.442695, %v4421_v34 }
 0xde6   : > { %v4529_v37 = vpop.permute.xlu1 %4528  ;;  %v4419_v38 = vpop.xlane.xlu0 %4418 }
 0xde7   : > { %7311 = vpow2.f32 %v4426_v35  ;;  %7015 = vmatpush3.msra.mxu1 %v4529_v37  ;;  %v4423_v47 = vsub.f32 %v4404_v14, %v4419_v38 }
 0xde8   : > { %7024 = vmatprep.subr.mxu1 %v7573_v36 }
 0xde9   : > { %v4430_v50 = vmul.f32 1.442695, %v4423_v47 }
 0xdea   : > { %v4453_v40 = vpop.permute.xlu0 %4452  ;;  %v4605_v9 = vpop.permute.xlu1 %4604 }
 0xdeb   : > { %7010 = vmatpush3.msra.mxu0 %v4453_v40  ;;  %7313 = vpow2.f32 %v4430_v50 }
 0xdec   : > { %7019 = vmatprep.subr.mxu0 %v7573_v36 }
 0xdee   : > { %v4780_v53 = vpop.permute.xlu0 %4779  ;;  %v4681_v16 = vpop.permute.xlu1 %4680 }
 0xdf2   : > { %v4858_v17 = vpop.permute.xlu1 %4857 }
 0xdf4   : > { %v7312_v42 = vpop.eup %7311 }
 0xdf5   : > { %v4435_v45 = vsel %vm723_vm2, %v7312_v42, 0.0 }
 0xdf6   : > { %4436 = vadd.xlane.f32.xlu1 %v4435_v45 }
 0xdf8   : > { %v7314_v0 = vpop.eup %7313 }
 0xdf9   : > { %v4441_v4 = vsel %vm723_vm2, %v7314_v0, 0.0 }
 0xe07   : > { %4855 = vrot.lane.b32.xlu1 %v7917_v52, %s7580_s26 }
 0xe0b   : > { %5013 = vrot.lane.b32.xlu1 %v7933_v57, %s7580_s26 }
 0xe1f   : > { %v4434_v55 = vpop.xlane.xlu0 %4433 }
 0xe20   : > { %7315 = vrcp.f32 %v4434_v55 }
 0xe23   : > { %v4440_v61 = vpop.xlane.xlu0 %4439 }
 0xe24   : > { %7317 = vrcp.f32 %v4440_v61 }
 0xe27   : > { %v4778_v8 = vpop.permute.xlu0 %4777 }
 0xe2b   : > { %v4936_v14 = vpop.permute.xlu0 %4935 }
 0xe2d   : > { %v7316_v2 = vpop.eup %7315 }
 0xe2e   : > { %v4448_v6 = vmul.f32 %v7316_v2, %v7308_v27 }
 0xe2f   : > { %4442 = vadd.xlane.f32.xlu1 %v4441_v4  ;;  %v4934_v15 = vpop.permute.xlu0 %4933 }
 0xe30   : > { %7012 = vmatmul.mubr.msk.f32.vlgmr.msra.gmra.mxu0 %vm723_vm2, %v4448_v6 }
 0xe31   : > { %v7318_v10 = vpop.eup %7317  ;;  %7020 = vmatpush3.msra.mxu0 %v4605_v9  ;;  %7021 = vmatprep.mubr.msk.f32.mxu0 %vm7574_vm1, %v7573_v36 }
 0xe32   : > { %7029 = vmatprep.subr.mxu0 %v7573_v36  ;;  %v4450_v12 = vmul.f32 %v7318_v10, %v7310_v29 }
 0xe34   : > { %7022 = vmatmul.mubr.msk.f32.vlgmr.msra.gmra.mxu0 %vm723_vm2, %v4450_v12 }
 0xe35   : > { %7030 = vmatpush3.xpose.msk.msra.mxu0 %vm723_vm2, %v4780_v53  ;;  %7031 = vmatprep.mubr.msk.f32.mxu0 %vm7574_vm1, %v7573_v36 }
 0xe36   : > { %7039 = vmatprep.subr.mxu0 %v7573_v36 }
 0xe38   : > { %7032 = vmatmul.mubr.msk.f32.vlgmr.msra.gmra.mxu0 %vm723_vm2, %v4778_v8 }
 0xe39   : > { %7040 = vmatpush3.xpose.msk.msra.mxu0 %vm723_vm2, %v4936_v14  ;;  %7041 = vmatprep.mubr.msk.f32.mxu0 %vm7574_vm1, %v7573_v36 }
 0xe3a   : > { %7049 = vmatprep.subr.mxu0 %v7573_v36 }
 0xe3c   : > { %7042 = vmatmul.mubr.msk.f32.vlgmr.msra.gmra.mxu0 %vm723_vm2, %v4934_v15 }
 0xe3d   : > { %7051 = vmatprep.mubr.msk.f32.mxu0 %vm7574_vm1, %v7573_v36 }
 0xe40   : > { %5011 = vrot.lane.b32.xlu1 %v7948_v59, %s7580_s26 }
 0xe7f   : > { %v4437_v18 = vpop.xlane.xlu1 %4436 }
 0xe80   : > { %7319 = vrcp.f32 %v4437_v18 }
 0xe83   : > { %v4856_v24 = vpop.permute.xlu1 %4855 }
 0xe87   : > { %v5014_v26 = vpop.permute.xlu1 %5013 }
 0xe8d   : > { %v7320_v19 = vpop.eup %7319 }
 0xe8e   : > { %v4449_v20 = vmul.f32 %v7320_v19, %v7312_v42 }
 0xe90   : > { %7017 = vmatmul.mubr.msk.f32.vlgmr.msra.gmra.mxu1 %vm723_vm2, %v4449_v20 }
 0xe91   : > { %7025 = vmatpush3.msra.mxu1 %v4681_v16  ;;  %7026 = vmatprep.mubr.msk.f32.mxu1 %vm7574_vm1, %v7573_v36 }
 0xe92   : > { %7034 = vmatprep.subr.mxu1 %v7573_v36 }
 0xeb8   : > { %v4443_v27 = vpop.xlane.xlu1 %4442 }
 0xeb9   : > { %7321 = vrcp.f32 %v4443_v27 }
 0xebc   : > { %v5012_v30 = vpop.permute.xlu1 %5011 }
 0xec6   : > { %v7322_v28 = vpop.eup %7321 }
 0xec7   : > { %v4451_v29 = vmul.f32 %v7322_v28, %v7314_v0 }
 0xec9   : > { %7027 = vmatmul.mubr.msk.f32.vlgmr.msra.gmra.mxu1 %vm723_vm2, %v4451_v29 }
 0xeca   : > { %7035 = vmatpush3.xpose.msk.msra.mxu1 %vm723_vm2, %v4858_v17  ;;  %7036 = vmatprep.mubr.msk.f32.mxu1 %vm7574_vm1, %v7573_v36 }
 0xecb   : > { %7044 = vmatprep.subr.mxu1 %v7573_v36 }
 0xecd   : > { %7037 = vmatmul.mubr.msk.f32.vlgmr.msra.gmra.mxu1 %vm723_vm2, %v4856_v24 }
 0xece   : > { %7045 = vmatpush3.xpose.msk.msra.mxu1 %vm723_vm2, %v5014_v26  ;;  %7046 = vmatprep.mubr.msk.f32.mxu1 %vm7574_vm1, %v7573_v36 }
 0xecf   : > { %7054 = vmatprep.subr.mxu1 %v7573_v36 }
 0xed1   : > { %7047 = vmatmul.mubr.msk.f32.vlgmr.msra.gmra.mxu1 %vm723_vm2, %v5012_v30 }
 0xed2   : > { %7056 = vmatprep.mubr.msk.f32.mxu1 %vm7574_vm1, %v7573_v36 }
 0xef0   : > { %v8410_v32 = vpop.f32.mrf.mxu0 }
 0xef2   : > { %v7013_v34 = vpop.f32.mrf.mxu0 }
 0xef4   : > { %v8412_v35 = vpop.f32.mrf.mxu0 }
 0xef6   : > { %v7023_v37 = vpop.f32.mrf.mxu0 }
 0xef8   : > { %v4851_v38 = vpop.f32.mrf.mxu0 }
 0xef9   : > { %v5089_v40 = vsel %vm723_vm2, %v4851_v38, -inf }
 0xefa   : > { %5090 = vmax.xlane.f32.xlu0 %v5089_v40  ;;  %v7033_v42 = vpop.f32.mrf.mxu0 }
 0xefc   : > { %v5007_v45 = vpop.f32.mrf.mxu0 }
 0xefd   : > { %v5095_v47 = vsel %vm723_vm2, %v5007_v45, -inf }
 0xefe   : > { %5096 = vmax.xlane.f32.xlu0 %v5095_v47  ;;  %v7043_v50 = vpop.f32.mrf.mxu0 }
 0xf50   : > { %v8416_v53 = vpop.f32.mrf.mxu1 }
 0xf52   : > { %v7018_v55 = vpop.f32.mrf.mxu1 }
 0xf83   : > { %v5091_v12 = vpop.xlane.xlu0 %5090 }
 0xf84   : > { %v5101_v14 = vsub.f32 %v4851_v38, %v5091_v12 }
 0xf86   : > { %v5105_v16 = vmul.f32 1.442695, %v5101_v14 }
 0xf87   : > { %v5097_v15 = vpop.xlane.xlu0 %5096 }
 0xf88   : > { %v5103_v17 = vsub.f32 %v5007_v45, %v5097_v15  ;;  %7323 = vpow2.f32 %v5105_v16 }
 0xf89   : > { %v8418_v61 = vpop.f32.mrf.mxu1 }
 0xf8a   : > { %v5109_v18 = vmul.f32 1.442695, %v5103_v17 }
 0xf8b   : > { %v7028_v0 = vpop.f32.mrf.mxu1 }
 0xf8c   : > { %7325 = vpow2.f32 %v5109_v18 }
 0xf8d   : > { %v4929_v2 = vpop.f32.mrf.mxu1 }
 0xf8e   : > { %v5092_v4 = vsel %vm723_vm2, %v4929_v2, -inf }
 0xf8f   : > { %5093 = vmax.xlane.f32.xlu1 %v5092_v4  ;;  %v7038_v6 = vpop.f32.mrf.mxu1 }
 0xf91   : > { %v5085_v8 = vpop.f32.mrf.mxu1 }
 0xf92   : > { %v5098_v9 = vsel %vm723_vm2, %v5085_v8, -inf }
 0xf93   : > { %v7048_v10 = vpop.f32.mrf.mxu1  ;;  %5099 = vmax.xlane.f32.xlu0 %v5098_v9 }
 0xf95   : > { %v7324_v19 = vpop.eup %7323 }
 0xf96   : > { %v5113_v20 = vsel %vm723_vm2, %v7324_v19, 0.0 }
 0xf99   : > { %v7326_v24 = vpop.eup %7325 }
 0xf9a   : > { %v5119_v26 = vsel %vm723_vm2, %v7326_v24, 0.0 }
 0xfa0   : > { %5209 = vrot.lane.b32.xlu1 %v7959_v63, %s7580_s26 }
 0xfa4   : > { %5285 = vrot.lane.b32.xlu1 %v7996_v44, %s7580_s26 }
 0xfa8   : > { %5361 = vrot.lane.b32.xlu1 %v7967_v3, %s7580_s26 }
 0xfa9   : > { %5133 = vrot.lane.b32.xlu0 %v7962_v1, %s7580_s26  ;;  %s7496_s26 = sshll.u32 %s7589_s25, 4  ;;  %s7497_s26 = int_to_ptr.vmem [resolvable:$false] %s7496_s26 }
 0xfaa   : > { %p7499_p9 = scmp.lt.s32.totalorder %s8617_s12, %s7497_s26 }
 0xfac   : > { %5538 = vrot.lane.b32.xlu1 %v7911_v49, %s7581_s16 }
 0xfad   : > { %5460 = vrot.lane.b32.xlu0 %v7913_v51, %s7581_s16 }
 0xfcc   : > { %5114 = vadd.xlane.f32.xlu0 %v5113_v20 }
 0xfd0   : > { %5120 = vadd.xlane.f32.xlu0 %v5119_v26 }
 0xfe6   : > { %5458 = vrot.lane.b32.xlu0 %v7922_v54, %s7581_s16 }
 0xfea   : > { %5616 = vrot.lane.b32.xlu0 %v7927_v56, %s7581_s16 }
 0xfee   : > { %5614 = vrot.lane.b32.xlu0 %v7939_v58, %s7581_s16 }
0x1018   : > { %v5094_v49 = vpop.xlane.xlu1 %5093 }
0x1019   : > { %v5102_v51 = vsub.f32 %v4929_v2, %v5094_v49 }
0x101b   : > { %v5107_v27 = vmul.f32 1.442695, %v5102_v51 }
0x101c   : > { %v5210_v28 = vpop.permute.xlu1 %5209  ;;  %v5100_v29 = vpop.xlane.xlu0 %5099 }
0x101d   : > { %7327 = vpow2.f32 %v5107_v27  ;;  %7055 = vmatpush3.msra.mxu1 %v5210_v28  ;;  %v5104_v56 = vsub.f32 %v5085_v8, %v5100_v29 }
0x101e   : > { %7064 = vmatprep.subr.mxu1 %v7573_v36 }
0x101f   : > { %v5111_v58 = vmul.f32 1.442695, %v5104_v56 }
0x1020   : > { %v5134_v30 = vpop.permute.xlu0 %5133  ;;  %v5286_v0 = vpop.permute.xlu1 %5285 }
0x1021   : > { %7050 = vmatpush3.msra.mxu0 %v5134_v30  ;;  %7329 = vpow2.f32 %v5111_v58 }
0x1022   : > { %7059 = vmatprep.subr.mxu0 %v7573_v36 }
0x1024   : > { %v5461_v37 = vpop.permute.xlu0 %5460  ;;  %v5362_v6 = vpop.permute.xlu1 %5361 }
0x1028   : > { %v5539_v8 = vpop.permute.xlu1 %5538 }
0x102a   : > { %v7328_v54 = vpop.eup %7327 }
0x102b   : > { %v5116_v34 = vsel %vm723_vm2, %v7328_v54, 0.0 }
0x102c   : > { %5117 = vadd.xlane.f32.xlu1 %v5116_v34 }
0x102e   : > { %v7330_v42 = vpop.eup %7329 }
0x102f   : > { %v5122_v47 = vsel %vm723_vm2, %v7330_v42, 0.0 }
0x103d   : > { %5536 = vrot.lane.b32.xlu1 %v7917_v52, %s7581_s16 }
0x1041   : > { %5694 = vrot.lane.b32.xlu1 %v7933_v57, %s7581_s16 }
0x1055   : > { %v5115_v38 = vpop.xlane.xlu0 %5114 }
0x1056   : > { %7331 = vrcp.f32 %v5115_v38 }
0x1059   : > { %v5121_v40 = vpop.xlane.xlu0 %5120 }
0x105a   : > { %7333 = vrcp.f32 %v5121_v40 }
0x105d   : > { %v5459_v55 = vpop.permute.xlu0 %5458 }
0x1061   : > { %v5617_v2 = vpop.permute.xlu0 %5616 }
0x1063   : > { %v7332_v45 = vpop.eup %7331 }
0x1064   : > { %v5129_v50 = vmul.f32 %v7332_v45, %v7324_v19 }
0x1065   : > { %5123 = vadd.xlane.f32.xlu1 %v5122_v47  ;;  %v5615_v4 = vpop.permute.xlu0 %5614 }
0x1066   : > { %7052 = vmatmul.mubr.msk.f32.vlgmr.msra.gmra.mxu0 %vm723_vm2, %v5129_v50 }
0x1067   : > { %v7334_v52 = vpop.eup %7333  ;;  %7060 = vmatpush3.msra.mxu0 %v5286_v0  ;;  %7061 = vmatprep.mubr.msk.f32.mxu0 %vm7574_vm1, %v7573_v36 }
0x1068   : > { %7069 = vmatprep.subr.mxu0 %v7573_v36  ;;  %v5131_v57 = vmul.f32 %v7334_v52, %v7326_v24 }
0x106a   : > { %7062 = vmatmul.mubr.msk.f32.vlgmr.msra.gmra.mxu0 %vm723_vm2, %v5131_v57 }
0x106b   : > { %7070 = vmatpush3.xpose.msk.msra.mxu0 %vm723_vm2, %v5461_v37  ;;  %7071 = vmatprep.mubr.msk.f32.mxu0 %vm7574_vm1, %v7573_v36 }
0x106c   : > { %7079 = vmatprep.subr.mxu0 %v7573_v36 }
0x106e   : > { %7072 = vmatmul.mubr.msk.f32.vlgmr.msra.gmra.mxu0 %vm723_vm2, %v5459_v55 }
0x106f   : > { %7080 = vmatpush3.xpose.msk.msra.mxu0 %vm723_vm2, %v5617_v2  ;;  %7081 = vmatprep.mubr.msk.f32.mxu0 %vm7574_vm1, %v7573_v36 }
0x1070   : > { %7089 = vmatprep.subr.mxu0 %v7573_v36 }
0x1072   : > { %7082 = vmatmul.mubr.msk.f32.vlgmr.msra.gmra.mxu0 %vm723_vm2, %v5615_v4 }
0x1073   : > { %7091 = vmatprep.mubr.msk.f32.mxu0 %vm7574_vm1, %v7573_v36 }
0x1076   : > { %5692 = vrot.lane.b32.xlu1 %v7948_v59, %s7581_s16 }
0x10b5   : > { %v5118_v9 = vpop.xlane.xlu1 %5117 }
0x10b6   : > { %7335 = vrcp.f32 %v5118_v9 }
0x10b9   : > { %v5537_v14 = vpop.permute.xlu1 %5536 }
0x10bd   : > { %v5695_v15 = vpop.permute.xlu1 %5694 }
0x10c3   : > { %v7336_v10 = vpop.eup %7335 }
0x10c4   : > { %v5130_v12 = vmul.f32 %v7336_v10, %v7328_v54 }
0x10c6   : > { %7057 = vmatmul.mubr.msk.f32.vlgmr.msra.gmra.mxu1 %vm723_vm2, %v5130_v12 }
0x10c7   : > { %7065 = vmatpush3.msra.mxu1 %v5362_v6  ;;  %7066 = vmatprep.mubr.msk.f32.mxu1 %vm7574_vm1, %v7573_v36 }
0x10c8   : > { %7074 = vmatprep.subr.mxu1 %v7573_v36 }
0x10ee   : > { %v5124_v16 = vpop.xlane.xlu1 %5123 }
0x10ef   : > { %7337 = vrcp.f32 %v5124_v16 }
0x10f2   : > { %v5693_v18 = vpop.permute.xlu1 %5692 }
0x10fc   : > { %v7338_v17 = vpop.eup %7337 }
0x10fd   : > { %v5132_v59 = vmul.f32 %v7338_v17, %v7330_v42 }
0x10ff   : > { %7067 = vmatmul.mubr.msk.f32.vlgmr.msra.gmra.mxu1 %vm723_vm2, %v5132_v59 }
0x1100   : > { %7075 = vmatpush3.xpose.msk.msra.mxu1 %vm723_vm2, %v5539_v8  ;;  %7076 = vmatprep.mubr.msk.f32.mxu1 %vm7574_vm1, %v7573_v36 }
0x1101   : > { %7084 = vmatprep.subr.mxu1 %v7573_v36 }
0x1103   : > { %7077 = vmatmul.mubr.msk.f32.vlgmr.msra.gmra.mxu1 %vm723_vm2, %v5537_v14 }
0x1104   : > { %7085 = vmatpush3.xpose.msk.msra.mxu1 %vm723_vm2, %v5695_v15  ;;  %7086 = vmatprep.mubr.msk.f32.mxu1 %vm7574_vm1, %v7573_v36 }
0x1105   : > { %7094 = vmatprep.subr.mxu1 %v7573_v36 }
0x1107   : > { %7087 = vmatmul.mubr.msk.f32.vlgmr.msra.gmra.mxu1 %vm723_vm2, %v5693_v18 }
0x1108   : > { %7096 = vmatprep.mubr.msk.f32.mxu1 %vm7574_vm1, %v7573_v36 }
0x1126   : > { %v8486_v19 = vpop.f32.mrf.mxu0 }
0x1128   : > { %v7053_v20 = vpop.f32.mrf.mxu0 }
0x112a   : > { %v5357_v24 = vpop.f32.mrf.mxu0 }
0x112c   : > { %v7063_v26 = vpop.f32.mrf.mxu0 }
0x112e   : > { %v5532_v49 = vpop.f32.mrf.mxu0 }
0x112f   : > { %v5770_v51 = vsel %vm723_vm2, %v5532_v49, -inf }
0x1130   : > { %5771 = vmax.xlane.f32.xlu0 %v5770_v51  ;;  %v7073_v27 = vpop.f32.mrf.mxu0 }
0x1132   : > { %v5688_v28 = vpop.f32.mrf.mxu0 }
0x1133   : > { %v5776_v29 = vsel %vm723_vm2, %v5688_v28, -inf }
0x1134   : > { %5777 = vmax.xlane.f32.xlu0 %v5776_v29  ;;  %v7083_v30 = vpop.f32.mrf.mxu0 }
0x1186   : > { %v5281_v54 = vpop.f32.mrf.mxu1 }
0x1188   : > { %v7058_v34 = vpop.f32.mrf.mxu1 }
0x11b9   : > { %v5772_v56 = vpop.xlane.xlu0 %5771 }
0x11ba   : > { %v5782_v58 = vsub.f32 %v5532_v49, %v5772_v56 }
0x11bc   : > { %v5786_v37 = vmul.f32 1.442695, %v5782_v58 }
0x11bd   : > { %v5778_v38 = vpop.xlane.xlu0 %5777 }
0x11be   : > { %7339 = vpow2.f32 %v5786_v37  ;;  %v5784_v40 = vsub.f32 %v5688_v28, %v5778_v38 }
0x11bf   : > { %v8490_v42 = vpop.f32.mrf.mxu1 }
0x11c0   : > { %v5790_v45 = vmul.f32 1.442695, %v5784_v40 }
0x11c1   : > { %v7068_v47 = vpop.f32.mrf.mxu1 }
0x11c2   : > { %7341 = vpow2.f32 %v5790_v45  ;;  %v6150_v45 = vld [vmem:[#allocation11 + $0x38] sm:$0xff]  ;;  %v6149_v47 = vld [vmem:[#allocation11 + $0x30] sm:$0xff] }
0x11c3   : > { %v5610_v50 = vpop.f32.mrf.mxu1 }
0x11c4   : > { %v5773_v55 = vsel %vm723_vm2, %v5610_v50, -inf }
0x11c5   : > { %5774 = vmax.xlane.f32.xlu1 %v5773_v55  ;;  %v7078_v0 = vpop.f32.mrf.mxu1  ;;  %v6147_v55 = vld [vmem:[#allocation11 + $0x20] sm:$0xff] }
0x11c7   : > { %v8493_v52 = vpop.f32.mrf.mxu1 }
0x11c8   : > { %v5779_v57 = vsel %vm723_vm2, %v8493_v52, -inf }
0x11c9   : > { %v7088_v2 = vpop.f32.mrf.mxu1  ;;  %5780 = vmax.xlane.f32.xlu0 %v5779_v57 }
0x11ca   : > { %v6146_v2 = vld [vmem:[#allocation11 + $0x18] sm:$0xff] }
0x11cb   : > { %v7340_v4 = vpop.eup %7339 }
0x11cc   : > { %v5794_v6 = vsel %vm723_vm2, %v7340_v4, 0.0 }
0x11cd   : > { %5795 = vadd.xlane.f32.xlu0 %v5794_v6  ;;  %v6144_v6 = vld [vmem:[#allocation11 + $0x8] sm:$0xff] }
0x11cf   : > { %v8498_v8 = vpop.eup %7341 }
0x11d0   : > { %v5800_v9 = vsel %vm723_vm2, %v8498_v8, 0.0 }
0x11d1   : > { %5801 = vadd.xlane.f32.xlu0 %v5800_v9 }
0x11e7   : > { %5814 = vrot.lane.b32.xlu0 %v7962_v1, %s7581_s16 }
0x11eb   : > { %2036 = vrot.lane.b32.xlu0 %v8106_v21, %s7582_s28 }
0x11ef   : > { %2717 = vrot.lane.b32.xlu0 %v8182_v41, %s7583_s4 }
0x11f3   : > { %3398 = vrot.lane.b32.xlu0 %v8258_v11, %s7584_s30 }
0x11f7   : > { %4079 = vrot.lane.b32.xlu0 %v8334_v46, %s7585_s27 }
0x11fb   : > { %4081 = vrot.lane.b32.xlu0 %v8340_v5, %s7585_s27 }
0x11ff   : > { %2042 = vrot.lane.b32.xlu0 %v8114_v33, %s7582_s28 }
0x1203   : > { %4762 = vrot.lane.b32.xlu0 %v8416_v53, %s7586_s29 }
0x1207   : > { %2723 = vrot.lane.b32.xlu0 %v8190_v62, %s7583_s4 }
0x120b   : > { %5443 = vrot.lane.b32.xlu0 %v5281_v54, %s7587_s11 }
0x120f   : > { %3404 = vrot.lane.b32.xlu0 %v8266_v25, %s7584_s30 }
0x1213   : > { %4764 = vrot.lane.b32.xlu0 %v8412_v35, %s7586_s29 }
0x1217   : > { %5445 = vrot.lane.b32.xlu0 %v5357_v24, %s7587_s11 }
0x124e   : > { %v5775_v1 = vpop.xlane.xlu1 %5774 }
0x124f   : > { %v5783_v21 = vsub.f32 %v5610_v50, %v5775_v1  ;;  %v6148_v50 = vld [vmem:[#allocation11 + $0x28] sm:$0xff] }
0x1251   : > { %v5788_v33 = vmul.f32 1.442695, %v5783_v21 }
0x1252   : > { %v5781_v41 = vpop.xlane.xlu0 %5780 }
0x1253   : > { %7343 = vpow2.f32 %v5788_v33  ;;  %v5785_v20 = vsub.f32 %v8493_v52, %v5781_v41 }
0x1255   : > { %v5792_v26 = vmul.f32 1.442695, %v5785_v20 }
0x1256   : > { %v5796_v11 = vpop.xlane.xlu0 %5795 }
0x1257   : > { %7345 = vrcp.f32 %v5796_v11 }
0x1258   : > { %7347 = vpow2.f32 %v5792_v26 }
0x125a   : > { %v5802_v46 = vpop.xlane.xlu0 %5801 }
0x125b   : > { %7349 = vrcp.f32 %v5802_v46 }
0x125e   : > { %v5815_v62 = vpop.permute.xlu0 %5814 }
0x125f   : > { %7090 = vmatpush3.msra.mxu0 %v5815_v62 }
0x1260   : > { %v7344_v5 = vpop.eup %7343  ;;  %7099 = vmatprep.subr.mxu0 %v7573_v36 }
0x1261   : > { %v5797_v25 = vsel %vm723_vm2, %v7344_v5, 0.0 }
0x1262   : > { %5798 = vadd.xlane.f32.xlu1 %v5797_v25  ;;  %v2037_v35 = vpop.permute.xlu0 %2036 }
0x1263   : > { %2049 = vst.msk [vmem:[#allocation2] sm:$0xff] %vm2048_vm3, %v2037_v35 }
0x1264   : > { %v7346_v53 = vpop.eup %7345 }
0x1265   : > { %v5810_v12 = vmul.f32 %v7346_v53, %v7340_v4  ;;  %v7348_v51 = vpop.eup %7347  ;;  %v6145_v4 = vld [vmem:[#allocation11 + $0x10] sm:$0xff] }
0x1266   : > { %v2718_v10 = vpop.permute.xlu0 %2717 }
0x1267   : > { %2730 = vst.msk [vmem:[#allocation2] sm:$0xff] %vm2729_vm4, %v2718_v10  ;;  %7092 = vmatmul.mubr.msk.f32.vlgmr.msra.gmra.mxu0 %vm723_vm2, %v5810_v12  ;;  %v6153_v10 = vsub.s32 3, %v7904_v39  ;;  %v7355_v12 = vld [vmem:[%s8673_s5] sm:$0xf] }
0x1268   : > { %7101 = vmatprep.mubr.msk.f32.mxu0 %vm7574_vm1, %v7573_v36 }
0x126a   : > { %v3399_v14 = vpop.permute.xlu0 %3398 }
0x126b   : > { %3411 = vst.msk [vmem:[#allocation2] sm:$0xff] %vm3410_vm5, %v3399_v14  ;;  %v6154_v14 = vrot.slane %v7355_v12, %v6153_v10 }
0x126e   : > { %v4080_v15 = vpop.permute.xlu0 %4079 }
0x126f   : > { %4092 = vst.msk [vmem:[#allocation2] sm:$0xff] %vm4091_vm6, %v4080_v15 }
0x1272   : > { %v8535_v16 = vpop.permute.xlu0 %4081 }
0x1273   : > { %5890 = vrot.lane.b32.xlu1 %v7959_v63, %s7581_s16  ;;  %v5803_v63 = vsel %vm723_vm2, %v7348_v51, 0.0 }
0x1276   : > { %v2043_v17 = vpop.permute.xlu0 %2042 }
0x1277   : > { %2052 = vst.msk [vmem:[#allocation2 + $0x18] sm:$0xff] %vm2048_vm3, %v2043_v17  ;;  %5966 = vrot.lane.b32.xlu1 %v7996_v44, %s7581_s16 }
0x127a   : > { %v4763_v59 = vpop.permute.xlu0 %4762 }
0x127e   : > { %v2724_v18 = vpop.permute.xlu0 %2723 }
0x127f   : > { %2733 = vst.msk [vmem:[#allocation2 + $0x18] sm:$0xff] %vm2729_vm4, %v2724_v18 }
0x1282   : > { %v5444_v24 = vpop.permute.xlu0 %5443 }
0x1286   : > { %v3405_v49 = vpop.permute.xlu0 %3404 }
0x1287   : > { %3414 = vst.msk [vmem:[#allocation2 + $0x18] sm:$0xff] %vm3410_vm5, %v3405_v49 }
0x128a   : > { %v4765_v56 = vpop.permute.xlu0 %4764 }
0x128e   : > { %v5446_v38 = vpop.permute.xlu0 %5445 }
0x129b   : > { %5804 = vadd.xlane.f32.xlu1 %v5803_v63 }
0x12ac   : > { %6042 = vrot.lane.b32.xlu1 %v7967_v3, %s7581_s16  ;;  %s7498_s16 = scalar_lea.vmem %s7497_s26, 1024 }
0x12ad   : > { %p7500_p10 = scmp.lt.s32.totalorder %s7498_s16, %s7492_s17 }
0x12af   : > { %p7501_p1 = por %p7500_p10, %p7499_p9 }
0x12b0   : > { %2038 = vrot.lane.b32.xlu1 %v8112_v31, %s7582_s28 }
0x12b1   : > { %p7502_p5 = pnand %p7501_p1, %p7495_p7 }
0x12b4   : > { %2719 = vrot.lane.b32.xlu1 %v8188_v60, %s7583_s4 }
0x12b8   : > { %3400 = vrot.lane.b32.xlu1 %v8264_v22, %s7584_s30 }
0x12bc   : > { %2040 = vrot.lane.b32.xlu1 %v8108_v23, %s7582_s28  ;;  %v7350_v23 = vpop.eup %7349 }
0x12c0   : > { %4760 = vrot.lane.b32.xlu1 %v8410_v32, %s7586_s29 }
0x12c4   : > { %2721 = vrot.lane.b32.xlu1 %v8184_v43, %s7583_s4  ;;  %v5812_v43 = vmul.f32 %v7350_v23, %v8498_v8  ;;  %v6143_v8 = vld [vmem:[#allocation11] sm:$0xff] }
0x12c8   : > { %5441 = vrot.lane.b32.xlu1 %v8486_v19, %s7587_s11 }
0x12cc   : > { %3402 = vrot.lane.b32.xlu1 %v8260_v13, %s7584_s30 }
0x12d0   : > { %4083 = vrot.lane.b32.xlu1 %v8336_v48, %s7585_s27 }
0x12d4   : > { %4085 = vrot.lane.b32.xlu1 %v8342_v7, %s7585_s27 }
0x12d8   : > { %4766 = vrot.lane.b32.xlu1 %v8418_v61, %s7586_s29 }
0x12eb   : > { %v5799_v3 = vpop.xlane.xlu1 %5798 }
0x12ec   : > { %7351 = vrcp.f32 %v5799_v3 }
0x12ef   : > { %v5891_v44 = vpop.permute.xlu1 %5890 }
0x12f0   : > { %7095 = vmatpush3.msra.mxu1 %v5891_v44 }
0x12f1   : > { %7104 = vmatprep.subr.mxu1 %v7573_v36 }
0x12f3   : > { %v5967_v31 = vpop.permute.xlu1 %5966 }
0x12f4   : > { %7100 = vmatpush3.msra.mxu0 %v5967_v31 }
0x12f5   : > { %7102 = vmatmul.mubr.msk.f32.vlgmr.msra.gmra.mxu0 %vm723_vm2, %v5812_v43  ;;  %7109 = vmatprep.subr.mxu0 %v6150_v45 }
0x12f6   : > { %7110 = vmatpush3.msra.mxu0 %v6150_v45 }
0x12f7   : > { %7111 = vmatprep.subr.mxu0 %v6149_v47 }
0x12f8   : > { %7112 = vmatpush3.msra.mxu0 %v6149_v47 }
0x12f9   : > { %v7352_v60 = vpop.eup %7351  ;;  %7113 = vmatprep.subr.mxu0 %v6148_v50 }
0x12fa   : > { %v5811_v13 = vmul.f32 %v7352_v60, %v7344_v5  ;;  %7114 = vmatpush3.msra.mxu0 %v6148_v50 }
0x12fb   : > { %7115 = vmatprep.subr.mxu0 %v6147_v55 }
0x12fc   : > { %7097 = vmatmul.mubr.msk.f32.vlgmr.msra.gmra.mxu1 %vm723_vm2, %v5811_v13  ;;  %7116 = vmatpush3.msra.mxu0 %v6147_v55 }
0x12fd   : > { %7106 = vmatprep.mubr.msk.f32.mxu1 %vm7574_vm1, %v7573_v36  ;;  %7117 = vmatprep.subr.mxu0 %v6146_v2 }
0x12fe   : > { %7118 = vmatpush3.msra.mxu0 %v6146_v2 }
0x12ff   : > { %7119 = vmatprep.subr.mxu0 %v6145_v4 }
0x1300   : > { %7120 = vmatpush3.msra.mxu0 %v6145_v4 }
0x1301   : > { %7121 = vmatprep.subr.mxu0 %v6144_v6 }
0x1302   : > { %7122 = vmatpush3.msra.mxu0 %v6144_v6 }
0x1303   : > { %7123 = vmatprep.subr.mxu0 %v6143_v8 }
0x1304   : > { %7124 = vmatpush3.msra.mxu0 %v6143_v8 }
0x1324   : > { %v5805_v22 = vpop.xlane.xlu1 %5804 }
0x1325   : > { %7353 = vrcp.f32 %v5805_v22 }
0x1327   : > { %v5886_v48 = vpop.f32.mrf.mxu0 }
0x1328   : > { %v6043_v7 = vpop.permute.xlu1 %6042  ;;  %6122 = vrot.lane.b32.xlu1 %v5886_v48, %s7588_s7 }
0x1329   : > { %7105 = vmatpush3.msra.mxu1 %v6043_v7  ;;  %v7093_v32 = vpop.f32.mrf.mxu0 }
0x132c   : > { %v2039_v61 = vpop.permute.xlu1 %2038  ;;  %5447 = vrot.lane.b32.xlu1 %v8490_v42, %s7587_s11 }
0x132d   : > { %2050 = vst.msk [vmem:[#allocation2 + $0x8] sm:$0xff] %vm2048_vm3, %v2039_v61 }
0x1330   : > { %v2720_v19 = vpop.permute.xlu1 %2719 }
0x1331   : > { %2731 = vst.msk [vmem:[#allocation2 + $0x8] sm:$0xff] %vm2729_vm4, %v2720_v19 }
0x1332   : > { %v7354_v27 = vpop.eup %7353 }
0x1333   : > { %v5813_v36 = vmul.f32 %v7354_v27, %v7348_v51 }
0x1334   : > { %v3401_v28 = vpop.permute.xlu1 %3400 }
0x1335   : > { %3412 = vst.msk [vmem:[#allocation2 + $0x8] sm:$0xff] %vm3410_vm5, %v3401_v28  ;;  %7107 = vmatmul.mubr.msk.f32.vlgmr.msra.gmra.mxu1 %vm723_vm2, %v5813_v36 }
0x1336   : > { %4093 = vst.msk [vmem:[#allocation2 + $0x8] sm:$0xff] %vm4091_vm6, %v8535_v16 }
0x1337   : > { %4774 = vst.msk [vmem:[#allocation2 + $0x8] sm:$0xff] %vm4772_vm7, %v4763_v59 }
0x1338   : > { %v2041_v29 = vpop.permute.xlu1 %2040  ;;  %5455 = vst.msk [vmem:[#allocation2 + $0x8] sm:$0xff] %vm5453_vm8, %v5444_v24 }
0x1339   : > { %2051 = vst.msk [vmem:[#allocation2 + $0x10] sm:$0xff] %vm2048_vm3, %v2041_v29 }
0x133c   : > { %v4761_v30 = vpop.permute.xlu1 %4760 }
0x133d   : > { %4773 = vst.msk [vmem:[#allocation2] sm:$0xff] %vm4772_vm7, %v4761_v30 }
0x1340   : > { %v2722_v54 = vpop.permute.xlu1 %2721 }
0x1341   : > { %2732 = vst.msk [vmem:[#allocation2 + $0x10] sm:$0xff] %vm2729_vm4, %v2722_v54 }
0x1344   : > { %v5442_v34 = vpop.permute.xlu1 %5441 }
0x1345   : > { %5454 = vst.msk [vmem:[#allocation2] sm:$0xff] %vm5453_vm8, %v5442_v34 }
0x1348   : > { %v3403_v58 = vpop.permute.xlu1 %3402 }
0x1349   : > { %3413 = vst.msk [vmem:[#allocation2 + $0x10] sm:$0xff] %vm3410_vm5, %v3403_v58 }
0x134c   : > { %v4084_v37 = vpop.permute.xlu1 %4083 }
0x134d   : > { %4094 = vst.msk [vmem:[#allocation2 + $0x10] sm:$0xff] %vm4091_vm6, %v4084_v37 }
0x134e   : > { %4775 = vst.msk [vmem:[#allocation2 + $0x10] sm:$0xff] %vm4772_vm7, %v4765_v56 }
0x134f   : > { %5456 = vst.msk [vmem:[#allocation2 + $0x10] sm:$0xff] %vm5453_vm8, %v5446_v38 }
0x1350   : > { %v4086_v40 = vpop.permute.xlu1 %4085 }
0x1351   : > { %4095 = vst.msk [vmem:[#allocation2 + $0x18] sm:$0xff] %vm4091_vm6, %v4086_v40 }
0x1354   : > { %v4767_v42 = vpop.permute.xlu1 %4766 }
0x1355   : > { %4776 = vst.msk [vmem:[#allocation2 + $0x18] sm:$0xff] %vm4772_vm7, %v4767_v42 }
0x139a   : > { %v6123_v0 = vpop.permute.xlu1 %6122 }
0x139b   : > { %6135 = vst.msk [vmem:[#allocation2] sm:$0xff] %vm6134_vm9, %v6123_v0 }
0x139e   : > { %v5448_v52 = vpop.permute.xlu1 %5447 }
0x139f   : > { %5457 = vst.msk [vmem:[#allocation2 + $0x18] sm:$0xff] %vm5453_vm8, %v5448_v52 }
0x13a2   : > { %v6139_v57 = vld [vmem:[#allocation2] sm:$0xff] }
0x13a3   : > { %7125 = vmatprep.mubr.msk.f32.mxu0 %vm397_vm0, %v6139_v57 }
0x13b5   : > { %v6038_v9 = vpop.f32.mrf.mxu0 }
0x13b7   : > { %v7103_v1 = vpop.f32.mrf.mxu0 }
0x13bc   : > { %v5962_v21 = vpop.f32.mrf.mxu1 }
0x13bd   : > { %6124 = vrot.lane.b32.xlu0 %v5962_v21, %s7588_s7 }
0x13be   : > { %v7098_v33 = vpop.f32.mrf.mxu1 }
0x13c1   : > { %6126 = vrot.lane.b32.xlu0 %v6038_v9, %s7588_s7 }
0x13f5   : > { %v6114_v41 = vpop.f32.mrf.mxu1 }
0x13f6   : > { %6128 = vrot.lane.b32.xlu1 %v6114_v41, %s7588_s7 }
0x13f7   : > { %v7108_v11 = vpop.f32.mrf.mxu1 }
0x142f   : > { %v6125_v46 = vpop.permute.xlu0 %6124 }
0x1430   : > { %6136 = vst.msk [vmem:[#allocation2 + $0x8] sm:$0xff] %vm6134_vm9, %v6125_v46 }
0x1433   : > { %v6127_v62 = vpop.permute.xlu0 %6126 }
0x1434   : > { %6137 = vst.msk [vmem:[#allocation2 + $0x10] sm:$0xff] %vm6134_vm9, %v6127_v62 }
0x1437   : > { %v6140_v5 = vld [vmem:[#allocation2 + $0x8] sm:$0xff] }
0x1438   : > { %7126 = vmatmul.mubr.msk.f32.vlgmr.msra.gmra.mxu0 %vm397_vm0, %v6140_v5 }
0x143b   : > { %v6141_v25 = vld [vmem:[#allocation2 + $0x10] sm:$0xff] }
0x143c   : > { %7128 = vmatprep.mubr.msk.f32.mxu0 %vm397_vm0, %v6141_v25 }
0x1468   : > { %v6129_v35 = vpop.permute.xlu1 %6128 }
0x1469   : > { %6138 = vst.msk [vmem:[#allocation2 + $0x18] sm:$0xff] %vm6134_vm9, %v6129_v35 }
0x1470   : > { %v6142_v53 = vld [vmem:[#allocation2 + $0x18] sm:$0xff] }
0x1471   : > { %7129 = vmatmul.mubr.msk.f32.gmra.mxu0 %vm397_vm0, %v6142_v53 }
0x14f8   : > { %v7127_v15 = vpop.f32.mrf.mxu0 }
0x14f9   : > { %v6239_v16 = vadd.f32 %v7127_v15, %v6154_v14 }
0x14fa   : > { %v6233_v17 = vpop.f32.mrf.mxu0 }
0x14fb   : > { %6253 = vst.msk [vmem:[%s375_s8 + $0x8] sm:$0xff] %vm397_vm0, %v6239_v16  ;;  %v6234_v59 = vadd.f32 %v6233_v17, %v6154_v14 }
0x14fd   : > { %6252 = vst.msk [vmem:[%s375_s8] sm:$0xff] %vm397_vm0, %v6234_v59 }
0x1531   : > { %v7130_v18 = vpop.f32.mrf.mxu0 }
0x1532   : > { %v6249_v39 = vadd.f32 %v7130_v18, %v6154_v14 }
0x1533   : > { %v6243_v20 = vpop.f32.mrf.mxu0 }
0x1534   : > { %6255 = vst.msk [vmem:[%s375_s8 + $0x18] sm:$0xff] %vm397_vm0, %v6249_v39  ;;  %v6244_v24 = vadd.f32 %v6243_v20, %v6154_v14 }
0x1536   : > { %6254 = vst.msk [vmem:[%s375_s8 + $0x10] sm:$0xff] %vm397_vm0, %v6244_v24 }
0x1537   : > { %7505 = shalt.err (!%p7502_p5)
}
0x1538   : > { %s7506_s4 = scalar_lea.hbm %s8623_s20, 512  ;;  %s7510_s29 = scalar_lea.hbm %s8674_s6, 1024 }
0x1539   : > { %p7507_p12 = scmp.ne.s32.totalorder %s8623_s20, %s7506_s4  ;;  %p7511_p3 = scmp.lt.s32.totalorder %s8623_s20, %s8674_s6 }
0x153a   : > { %p7512_p4 = scmp.lt.s32.totalorder %s7510_s29, %s7506_s4 }
0x153b   : > { %p7508_p0 = pnand %p7507_p12, %p8714_p13 }
0x153c   : > { %p7513_p8 = por %p7512_p4, %p7511_p3 }
0x153d   : > { %p7509_p11 = pneg %p7508_p0 }
0x153f   : > { %p7514_p6 = pnand %p7513_p8, %p7509_p11 }
0x1541   : > { %7517 = shalt.err (!%p7514_p6)
}
0x1542   : > { %s7590_s3 = smov 128  }
0x1543   : > { %7145 = dma.vmem_to_hbm [thread:$0]  (%p8714_p13), %s8617_s12, 512, %s8623_s20, %s6257_s1, %s7590_s3, %s7590_s3, %s7582_s28  }
0x1544 PF: > { %s6285_s19 = sand.u32 1, %s7552_s21   ;;  %p8715_p2 = scmp.ne.s32.totalorder %s8697_s10, 0 }
0x1545   : > { %p8716_p7 = scmp.ge.s32.totalorder %s7564_s24, 2  ;;  %s6286_s8 = scalar_lea.sflag [#allocation5], %s6285_s19 }
0x1547   : > { %p7165_p9 = pnand %p8716_p7, %p8715_p2 }
0x1549   : > { %p7166_p10 = pneg %p7165_p9 }
0x154b   : > { %7547 = dma.done.wait (%p7166_p10), %s6286_s8, 512  }
0x154c   : > { %7549 = vsyncadd (%p7166_p10), %s6286_s8, 4294966784  ;;  %s8717_s24 = sld [smem:[#allocation17_spill]]  ;;  %s8719_s21 = smov %s7556_s22 }
0x154d   : > { %s8718_s9 = sld [smem:[#allocation18_spill]]  ;;  %s8720_s22 = smov %s7560_s23 }
0x1552   : > { %p23_p1 = scmp.ge.s32.totalorder %s8717_s24, 4  }
0x1553   : > { %s8721_s23 = smov %s8718_s9 }
0x1554   :  { %25 = sbr.rel (!%p23_p1) target bundleno = 12 (0xc), region = 123 }
0x1559   :  { %6291 = vsyncpa [#allocation4], 1 }
0x155a   :  { %6293 = vsyncpa [#allocation4 + $0x1], 1 }
0x155b   :  { %6294 = vsyncpa [#allocation7], 1 }
0x155c   :  { %6296 = vsyncpa [#allocation7 + $0x1], 1 }
0x155d   :  { %6297 = vsyncpa [#allocation10], 1 }
0x155e   :  { %6298 = vsyncpa [#allocation5], 1 }
0x155f   :  { %6300 = vsyncpa [#allocation5 + $0x1], 1 }

</bundles_post_ra>
